<compile_context>
chip_gen: v6e
topology: v6e:2x2x1
jax: 0.10.0
libtpu: 0.0.40
codegen_flags: <defaults>
</compile_context>

<pallas_src>
import jax
import jax.numpy as jnp
from jax.experimental import pallas as pl
from jax.experimental.pallas import tpu as pltpu


D_RT = 256      # rt feature dim
D_AUDIO = 512   # audio feature dim (D_RT + D_AUDIO = 768 = l1 input width)
H1, H2, H3, D_OUT = 256, 128, 64, 6
BN_EPS = 1e-5


def linear_decode_kernel(rt_ref, audio_ref,
                         w1r_ref, w1a_ref, b1_ref,
                         w2o1_ref, w2r_ref, w2a_ref, b2_ref,
                         w3o2_ref, w3o1_ref, b3_ref,
                         w4_ref, b4_ref,
                         out_ref):
    f32 = jnp.float32
    a = audio_ref[0]     # (t_tile, D_AUDIO)
    r = rt_ref[0]        # (1, D_RT) -- broadcast over the time tile via (1,·) matmuls

    # l1: Linear(768,256) [+ folded BN1] + ReLU, concat avoided via split weights
    h1 = (jnp.dot(a, w1a_ref[...], preferred_element_type=f32)
          + jnp.dot(r, w1r_ref[...], preferred_element_type=f32)
          + b1_ref[...])
    h1 = jnp.maximum(h1, 0.0)

    # l2: Linear(1024,128) on cat([out1, rt, audio]) [+ folded BN2] + ReLU
    h2 = (jnp.dot(h1, w2o1_ref[...], preferred_element_type=f32)
          + jnp.dot(a, w2a_ref[...], preferred_element_type=f32)
          + jnp.dot(r, w2r_ref[...], preferred_element_type=f32)
          + b2_ref[...])
    h2 = jnp.maximum(h2, 0.0)

    # l3 (first part): Linear(384,64) on cat([out2, out1]) [+ folded BN3] + ReLU
    h3 = (jnp.dot(h2, w3o2_ref[...], preferred_element_type=f32)
          + jnp.dot(h1, w3o1_ref[...], preferred_element_type=f32)
          + b3_ref[...])
    h3 = jnp.maximum(h3, 0.0)

    # l3 (second part): Linear(64, 6)
    out = jnp.dot(h3, w4_ref[...], preferred_element_type=f32) + b4_ref[...]
    out_ref[0] = out.astype(out_ref.dtype)


def _fold_bn(w, b, gamma, beta, mean, var, eps=BN_EPS):
    """Fold eval-mode BatchNorm1d into the preceding Linear (w:(in,out), b:(out,))."""
    scale = gamma / jnp.sqrt(var + eps)
    return w * scale[None, :], b * scale + (beta - mean * scale)


def linear_decode_forward(rt, audio, params, *, t_tile=None):
    """rt: (B, D_RT), audio: (B, T, D_AUDIO) -> (B, T, 6)."""
    B, T, Da = audio.shape
    Dr = rt.shape[-1]
    assert Dr + Da == 768, "rt_dim + audio_dim must equal 768 (l1 input width)"

    if t_tile is None:
        t_tile = min(T, 128)
    nt = pl.cdiv(T, t_tile)

    w1f, b1f = _fold_bn(params["w1"], params["b1"], params["g1"], params["be1"],
                        params["m1"], params["v1"])
    w2f, b2f = _fold_bn(params["w2"], params["b2"], params["g2"], params["be2"],
                        params["m2"], params["v2"])
    w3f, b3f = _fold_bn(params["w3"], params["b3"], params["g3"], params["be3"],
                        params["m3"], params["v3"])
    w4, b4 = params["w4"], params["b4"]

    # Split folded weights so the kernel never materializes the torch.cat's.
    w1r, w1a = w1f[:Dr], w1f[Dr:]                               # feat = [rt, audio]
    w2o1, w2r, w2a = w2f[:H1], w2f[H1:H1 + Dr], w2f[H1 + Dr:]   # [out1, rt, audio]
    w3o2, w3o1 = w3f[:H2], w3f[H2:]                             # [out2, out1]

    rt3 = rt.reshape(B, 1, Dr).astype(jnp.float32)
    audio = audio.astype(jnp.float32)

    def row2(x):
        return x.reshape(1, -1).astype(jnp.float32)

    def full(shape):
        return pl.BlockSpec(shape, lambda b, t: (0, 0))

    grid_spec = pltpu.PrefetchScalarGridSpec(
        num_scalar_prefetch=0,
        grid=(B, nt),
        in_specs=[
            pl.BlockSpec((1, 1, Dr), lambda b, t: (b, 0, 0)),        # rt (per batch)
            pl.BlockSpec((1, t_tile, Da), lambda b, t: (b, t, 0)),   # audio tile
            full((Dr, H1)), full((Da, H1)), full((1, H1)),
            full((H1, H2)), full((Dr, H2)), full((Da, H2)), full((1, H2)),
            full((H2, H3)), full((H1, H3)), full((1, H3)),
            full((H3, D_OUT)), full((1, D_OUT)),
        ],
        out_specs=pl.BlockSpec((1, t_tile, D_OUT), lambda b, t: (b, t, 0)),
    )

    return pl.pallas_call(
        linear_decode_kernel,
        out_shape=jax.ShapeDtypeStruct((B, T, D_OUT), jnp.float32),
        grid_spec=grid_spec,
        compiler_params=pltpu.CompilerParams(
            dimension_semantics=("parallel", "parallel")),
    )(rt3, audio,
      w1r.astype(jnp.float32), w1a.astype(jnp.float32), row2(b1f),
      w2o1.astype(jnp.float32), w2r.astype(jnp.float32), w2a.astype(jnp.float32), row2(b2f),
      w3o2.astype(jnp.float32), w3o1.astype(jnp.float32), row2(b3f),
      w4.astype(jnp.float32), row2(b4))


def reference_forward(rt, audio, params):
    """Pure-JAX mirror of the PyTorch eval-mode forward (concat + BN explicit)."""
    B, T, _ = audio.shape
    rt_rep = jnp.broadcast_to(rt[:, None, :], (B, T, rt.shape[-1]))
    feat = jnp.concatenate([rt_rep, audio], axis=-1).reshape(B * T, -1)

    def bn(x, g, beta, m, v):
        return g * (x - m) / jnp.sqrt(v + BN_EPS) + beta

    out1 = jax.nn.relu(bn(feat @ params["w1"] + params["b1"],
                          params["g1"], params["be1"], params["m1"], params["v1"]))
    x2 = jnp.concatenate([out1, feat], axis=-1)
    out2 = jax.nn.relu(bn(x2 @ params["w2"] + params["b2"],
                          params["g2"], params["be2"], params["m2"], params["v2"]))
    x3 = jnp.concatenate([out2, out1], axis=-1)
    h3 = jax.nn.relu(bn(x3 @ params["w3"] + params["b3"],
                        params["g3"], params["be3"], params["m3"], params["v3"]))
    out3 = h3 @ params["w4"] + params["b4"]
    return out3.reshape(B, T, D_OUT)


if __name__ == "__main__":
    key = jax.random.PRNGKey(0)
    keys = jax.random.split(key, 10)
    it = iter(keys)

    B, T = 2, 16   # small shapes; grid is (B=2, T/t_tile=2) to exercise pipelining

    rt = jax.random.normal(next(it), (B, D_RT), dtype=jnp.float32)
    audio = jax.random.normal(next(it), (B, T, D_AUDIO), dtype=jnp.float32)

    def linear_init(k, fan_in, fan_out):
        kw, kb = jax.random.split(k)
        bound = 1.0 / jnp.sqrt(fan_in)
        w = jax.random.uniform(kw, (fan_in, fan_out), minval=-bound, maxval=bound,
                               dtype=jnp.float32)
        b = jax.random.uniform(kb, (fan_out,), minval=-bound, maxval=bound,
                               dtype=jnp.float32)
        return w, b

    def bn_init(k, c):
        k1, k2, k3, k4 = jax.random.split(k, 4)
        g = jax.random.uniform(k1, (c,), minval=0.5, maxval=1.5, dtype=jnp.float32)
        be = 0.1 * jax.random.normal(k2, (c,), dtype=jnp.float32)
        m = 0.1 * jax.random.normal(k3, (c,), dtype=jnp.float32)
        v = jax.random.uniform(k4, (c,), minval=0.5, maxval=1.5, dtype=jnp.float32)
        return g, be, m, v

    w1, b1 = linear_init(next(it), D_RT + D_AUDIO, H1)   # Linear(768, 256)
    w2, b2 = linear_init(next(it), H1 + 768, H2)          # Linear(1024, 128)
    w3, b3 = linear_init(next(it), H2 + H1, H3)           # Linear(384, 64)
    w4, b4 = linear_init(next(it), H3, D_OUT)             # Linear(64, 6)
    g1, be1, m1, v1 = bn_init(next(it), H1)
    g2, be2, m2, v2 = bn_init(next(it), H2)
    g3, be3, m3, v3 = bn_init(next(it), H3)

    params = dict(w1=w1, b1=b1, w2=w2, b2=b2, w3=w3, b3=b3, w4=w4, b4=b4,
                  g1=g1, be1=be1, m1=m1, v1=v1,
                  g2=g2, be2=be2, m2=m2, v2=v2,
                  g3=g3, be3=be3, m3=m3, v3=v3)

    out = linear_decode_forward(rt, audio, params, t_tile=8)
    jax.block_until_ready(out)

    ref = reference_forward(rt, audio, params)
    assert out.shape == (B, T, D_OUT), out.shape
    max_err = float(jnp.max(jnp.abs(out - ref)))
    assert jnp.allclose(out, ref, atol=2e-2, rtol=2e-2), max_err

    # TODO(synk): Dropout is identity here (eval-mode forward); training-mode dropout /
    # batch-stat BatchNorm would need a PRNG + batch-reduction variant of this kernel.
    print("KERNEL_OK")
</pallas_src>

<mosaic_0001>
module attributes {stable_mosaic.version = 11 : i64} {
  func.func @linear_decode_kernel(%arg0: i32, %arg1: i32, %arg2: memref<1x1x256xf32, #tpu.memory_space<vmem>>, %arg3: memref<1x8x512xf32, #tpu.memory_space<vmem>>, %arg4: memref<256x256xf32, #tpu.memory_space<vmem>>, %arg5: memref<512x256xf32, #tpu.memory_space<vmem>>, %arg6: memref<1x256xf32, #tpu.memory_space<vmem>>, %arg7: memref<256x128xf32, #tpu.memory_space<vmem>>, %arg8: memref<256x128xf32, #tpu.memory_space<vmem>>, %arg9: memref<512x128xf32, #tpu.memory_space<vmem>>, %arg10: memref<1x128xf32, #tpu.memory_space<vmem>>, %arg11: memref<128x64xf32, #tpu.memory_space<vmem>>, %arg12: memref<256x64xf32, #tpu.memory_space<vmem>>, %arg13: memref<1x64xf32, #tpu.memory_space<vmem>>, %arg14: memref<64x6xf32, #tpu.memory_space<vmem>>, %arg15: memref<1x6xf32, #tpu.memory_space<vmem>>, %arg16: memref<1x8x6xf32, #tpu.memory_space<vmem>>) attributes {dimension_semantics = [#tpu.dimension_semantics<parallel>, #tpu.dimension_semantics<parallel>], iteration_bounds = array<i64: 2, 2>, scalar_prefetch = 0 : i64, scratch_operands = 0 : i64, tpu.core_type = #tpu.core_type<tc>, window_params = [{transform_indices = @transform_0, window_bounds = array<i64: 1, 1, 256>}, {transform_indices = @transform_1, window_bounds = array<i64: 1, 8, 512>}, {pipeline_mode = #tpu.pipeline_mode<synchronous>, transform_indices = @transform_2, window_bounds = array<i64: 256, 256>}, {pipeline_mode = #tpu.pipeline_mode<synchronous>, transform_indices = @transform_3, window_bounds = array<i64: 512, 256>}, {pipeline_mode = #tpu.pipeline_mode<synchronous>, transform_indices = @transform_4, window_bounds = array<i64: 1, 256>}, {pipeline_mode = #tpu.pipeline_mode<synchronous>, transform_indices = @transform_5, window_bounds = array<i64: 256, 128>}, {pipeline_mode = #tpu.pipeline_mode<synchronous>, transform_indices = @transform_6, window_bounds = array<i64: 256, 128>}, {pipeline_mode = #tpu.pipeline_mode<synchronous>, transform_indices = @transform_7, window_bounds = array<i64: 512, 128>}, {pipeline_mode = #tpu.pipeline_mode<synchronous>, transform_indices = @transform_8, window_bounds = array<i64: 1, 128>}, {pipeline_mode = #tpu.pipeline_mode<synchronous>, transform_indices = @transform_9, window_bounds = array<i64: 128, 64>}, {pipeline_mode = #tpu.pipeline_mode<synchronous>, transform_indices = @transform_10, window_bounds = array<i64: 256, 64>}, {pipeline_mode = #tpu.pipeline_mode<synchronous>, transform_indices = @transform_11, window_bounds = array<i64: 1, 64>}, {pipeline_mode = #tpu.pipeline_mode<synchronous>, transform_indices = @transform_12, window_bounds = array<i64: 64, 6>}, {pipeline_mode = #tpu.pipeline_mode<synchronous>, transform_indices = @transform_13, window_bounds = array<i64: 1, 6>}, {transform_indices = @transform_14, window_bounds = array<i64: 1, 8, 6>}]} {
    %c0 = arith.constant 0 : index
    %c0_0 = arith.constant 0 : index
    %c0_1 = arith.constant 0 : index
    %0 = vector.load %arg3[%c0, %c0_0, %c0_1] : memref<1x8x512xf32, #tpu.memory_space<vmem>>, vector<1x8x512xf32>
    %1 = vector.shape_cast %0 : vector<1x8x512xf32> to vector<8x512xf32>
    %c0_2 = arith.constant 0 : index
    %c0_3 = arith.constant 0 : index
    %c0_4 = arith.constant 0 : index
    %2 = vector.load %arg2[%c0_2, %c0_3, %c0_4] : memref<1x1x256xf32, #tpu.memory_space<vmem>>, vector<1x1x256xf32>
    %3 = vector.shape_cast %2 : vector<1x1x256xf32> to vector<1x256xf32>
    %c0_5 = arith.constant 0 : index
    %c0_6 = arith.constant 0 : index
    %4 = vector.load %arg5[%c0_5, %c0_6] : memref<512x256xf32, #tpu.memory_space<vmem>>, vector<512x256xf32>
    %cst = arith.constant dense<0.000000e+00> : vector<8x256xf32>
    %5 = tpu.matmul %1, %4, %cst {dimension_numbers = #tpu.dot_dimension_numbers<[1], [0], [0], [1], [0, 0, 1, 1], [], []>} : vector<8x512xf32>, vector<512x256xf32>, vector<8x256xf32> -> vector<8x256xf32>
    %c0_7 = arith.constant 0 : index
    %c0_8 = arith.constant 0 : index
    %6 = vector.load %arg4[%c0_7, %c0_8] : memref<256x256xf32, #tpu.memory_space<vmem>>, vector<256x256xf32>
    %cst_9 = arith.constant dense<0.000000e+00> : vector<1x256xf32>
    %7 = tpu.matmul %3, %6, %cst_9 {dimension_numbers = #tpu.dot_dimension_numbers<[1], [0], [0], [1], [0, 0, 1, 1], [], []>} : vector<1x256xf32>, vector<256x256xf32>, vector<1x256xf32> -> vector<1x256xf32>
    %8 = vector.broadcast %7 : vector<1x256xf32> to vector<8x256xf32>
    %9 = arith.addf %5, %8 : vector<8x256xf32>
    %c0_10 = arith.constant 0 : index
    %c0_11 = arith.constant 0 : index
    %10 = vector.load %arg6[%c0_10, %c0_11] : memref<1x256xf32, #tpu.memory_space<vmem>>, vector<1x256xf32>
    %11 = vector.broadcast %10 : vector<1x256xf32> to vector<8x256xf32>
    %12 = arith.addf %9, %11 : vector<8x256xf32>
    %cst_12 = arith.constant 0.000000e+00 : f32
    %13 = vector.broadcast %cst_12 : f32 to vector<8x256xf32>
    %14 = arith.maximumf %12, %13 : vector<8x256xf32>
    %c0_13 = arith.constant 0 : index
    %c0_14 = arith.constant 0 : index
    %15 = vector.load %arg7[%c0_13, %c0_14] : memref<256x128xf32, #tpu.memory_space<vmem>>, vector<256x128xf32>
    %cst_15 = arith.constant dense<0.000000e+00> : vector<8x128xf32>
    %16 = tpu.matmul %14, %15, %cst_15 {dimension_numbers = #tpu.dot_dimension_numbers<[1], [0], [0], [1], [0, 0, 1, 1], [], []>} : vector<8x256xf32>, vector<256x128xf32>, vector<8x128xf32> -> vector<8x128xf32>
    %c0_16 = arith.constant 0 : index
    %c0_17 = arith.constant 0 : index
    %17 = vector.load %arg9[%c0_16, %c0_17] : memref<512x128xf32, #tpu.memory_space<vmem>>, vector<512x128xf32>
    %cst_18 = arith.constant dense<0.000000e+00> : vector<8x128xf32>
    %18 = tpu.matmul %1, %17, %cst_18 {dimension_numbers = #tpu.dot_dimension_numbers<[1], [0], [0], [1], [0, 0, 1, 1], [], []>} : vector<8x512xf32>, vector<512x128xf32>, vector<8x128xf32> -> vector<8x128xf32>
    %19 = arith.addf %16, %18 : vector<8x128xf32>
    %c0_19 = arith.constant 0 : index
    %c0_20 = arith.constant 0 : index
    %20 = vector.load %arg8[%c0_19, %c0_20] : memref<256x128xf32, #tpu.memory_space<vmem>>, vector<256x128xf32>
    %cst_21 = arith.constant dense<0.000000e+00> : vector<1x128xf32>
    %21 = tpu.matmul %3, %20, %cst_21 {dimension_numbers = #tpu.dot_dimension_numbers<[1], [0], [0], [1], [0, 0, 1, 1], [], []>} : vector<1x256xf32>, vector<256x128xf32>, vector<1x128xf32> -> vector<1x128xf32>
    %22 = vector.broadcast %21 : vector<1x128xf32> to vector<8x128xf32>
    %23 = arith.addf %19, %22 : vector<8x128xf32>
    %c0_22 = arith.constant 0 : index
    %c0_23 = arith.constant 0 : index
    %24 = vector.load %arg10[%c0_22, %c0_23] : memref<1x128xf32, #tpu.memory_space<vmem>>, vector<1x128xf32>
    %25 = vector.broadcast %24 : vector<1x128xf32> to vector<8x128xf32>
    %26 = arith.addf %23, %25 : vector<8x128xf32>
    %cst_24 = arith.constant 0.000000e+00 : f32
    %27 = vector.broadcast %cst_24 : f32 to vector<8x128xf32>
    %28 = arith.maximumf %26, %27 : vector<8x128xf32>
    %c0_25 = arith.constant 0 : index
    %c0_26 = arith.constant 0 : index
    %29 = vector.load %arg11[%c0_25, %c0_26] : memref<128x64xf32, #tpu.memory_space<vmem>>, vector<128x64xf32>
    %cst_27 = arith.constant dense<0.000000e+00> : vector<8x64xf32>
    %30 = tpu.matmul %28, %29, %cst_27 {dimension_numbers = #tpu.dot_dimension_numbers<[1], [0], [0], [1], [0, 0, 1, 1], [], []>} : vector<8x128xf32>, vector<128x64xf32>, vector<8x64xf32> -> vector<8x64xf32>
    %c0_28 = arith.constant 0 : index
    %c0_29 = arith.constant 0 : index
    %31 = vector.load %arg12[%c0_28, %c0_29] : memref<256x64xf32, #tpu.memory_space<vmem>>, vector<256x64xf32>
    %cst_30 = arith.constant dense<0.000000e+00> : vector<8x64xf32>
    %32 = tpu.matmul %14, %31, %cst_30 {dimension_numbers = #tpu.dot_dimension_numbers<[1], [0], [0], [1], [0, 0, 1, 1], [], []>} : vector<8x256xf32>, vector<256x64xf32>, vector<8x64xf32> -> vector<8x64xf32>
    %33 = arith.addf %30, %32 : vector<8x64xf32>
    %c0_31 = arith.constant 0 : index
    %c0_32 = arith.constant 0 : index
    %34 = vector.load %arg13[%c0_31, %c0_32] : memref<1x64xf32, #tpu.memory_space<vmem>>, vector<1x64xf32>
    %35 = vector.broadcast %34 : vector<1x64xf32> to vector<8x64xf32>
    %36 = arith.addf %33, %35 : vector<8x64xf32>
    %cst_33 = arith.constant 0.000000e+00 : f32
    %37 = vector.broadcast %cst_33 : f32 to vector<8x64xf32>
    %38 = arith.maximumf %36, %37 : vector<8x64xf32>
    %c0_34 = arith.constant 0 : index
    %c0_35 = arith.constant 0 : index
    %39 = vector.load %arg14[%c0_34, %c0_35] : memref<64x6xf32, #tpu.memory_space<vmem>>, vector<64x6xf32>
    %cst_36 = arith.constant dense<0.000000e+00> : vector<8x6xf32>
    %40 = tpu.matmul %38, %39, %cst_36 {dimension_numbers = #tpu.dot_dimension_numbers<[1], [0], [0], [1], [0, 0, 1, 1], [], []>} : vector<8x64xf32>, vector<64x6xf32>, vector<8x6xf32> -> vector<8x6xf32>
    %c0_37 = arith.constant 0 : index
    %c0_38 = arith.constant 0 : index
    %41 = vector.load %arg15[%c0_37, %c0_38] : memref<1x6xf32, #tpu.memory_space<vmem>>, vector<1x6xf32>
    %42 = vector.broadcast %41 : vector<1x6xf32> to vector<8x6xf32>
    %43 = arith.addf %40, %42 : vector<8x6xf32>
    %c0_39 = arith.constant 0 : index
    %c0_40 = arith.constant 0 : index
    %c0_41 = arith.constant 0 : index
    %44 = vector.load %arg16[%c0_39, %c0_40, %c0_41] : memref<1x8x6xf32, #tpu.memory_space<vmem>>, vector<1x8x6xf32>
    %45 = vector.shape_cast %44 : vector<1x8x6xf32> to vector<8x6xf32>
    %46 = vector.shape_cast %43 : vector<8x6xf32> to vector<1x8x6xf32>
    tpu.vector_store %arg16[%c0_39, %c0_40, %c0_41], %46 {strides = array<i32>} : memref<1x8x6xf32, #tpu.memory_space<vmem>>, vector<1x8x6xf32>,
    return
  }
  func.func @transform_0(%arg0: i32, %arg1: i32) -> (i32, i32, i32) {
    %c0_i32 = arith.constant 0 : i32
    %c0_i32_0 = arith.constant 0 : i32
    %c0_i32_1 = arith.constant 0 : i32
    return %arg0, %c0_i32, %c0_i32_0 : i32, i32, i32
  }
  func.func @transform_1(%arg0: i32, %arg1: i32) -> (i32, i32, i32) {
    %c0_i32 = arith.constant 0 : i32
    %c0_i32_0 = arith.constant 0 : i32
    return %arg0, %arg1, %c0_i32 : i32, i32, i32
  }
  func.func @transform_2(%arg0: i32, %arg1: i32) -> (i32, i32) {
    %c0_i32 = arith.constant 0 : i32
    %c0_i32_0 = arith.constant 0 : i32
    %c0_i32_1 = arith.constant 0 : i32
    return %c0_i32, %c0_i32_0 : i32, i32
  }
  func.func @transform_3(%arg0: i32, %arg1: i32) -> (i32, i32) {
    %c0_i32 = arith.constant 0 : i32
    %c0_i32_0 = arith.constant 0 : i32
    %c0_i32_1 = arith.constant 0 : i32
    return %c0_i32, %c0_i32_0 : i32, i32
  }
  func.func @transform_4(%arg0: i32, %arg1: i32) -> (i32, i32) {
    %c0_i32 = arith.constant 0 : i32
    %c0_i32_0 = arith.constant 0 : i32
    %c0_i32_1 = arith.constant 0 : i32
    return %c0_i32, %c0_i32_0 : i32, i32
  }
  func.func @transform_5(%arg0: i32, %arg1: i32) -> (i32, i32) {
    %c0_i32 = arith.constant 0 : i32
    %c0_i32_0 = arith.constant 0 : i32
    %c0_i32_1 = arith.constant 0 : i32
    return %c0_i32, %c0_i32_0 : i32, i32
  }
  func.func @transform_6(%arg0: i32, %arg1: i32) -> (i32, i32) {
    %c0_i32 = arith.constant 0 : i32
    %c0_i32_0 = arith.constant 0 : i32
    %c0_i32_1 = arith.constant 0 : i32
    return %c0_i32, %c0_i32_0 : i32, i32
  }
  func.func @transform_7(%arg0: i32, %arg1: i32) -> (i32, i32) {
    %c0_i32 = arith.constant 0 : i32
    %c0_i32_0 = arith.constant 0 : i32
    %c0_i32_1 = arith.constant 0 : i32
    return %c0_i32, %c0_i32_0 : i32, i32
  }
  func.func @transform_8(%arg0: i32, %arg1: i32) -> (i32, i32) {
    %c0_i32 = arith.constant 0 : i32
    %c0_i32_0 = arith.constant 0 : i32
    %c0_i32_1 = arith.constant 0 : i32
    return %c0_i32, %c0_i32_0 : i32, i32
  }
  func.func @transform_9(%arg0: i32, %arg1: i32) -> (i32, i32) {
    %c0_i32 = arith.constant 0 : i32
    %c0_i32_0 = arith.constant 0 : i32
    %c0_i32_1 = arith.constant 0 : i32
    return %c0_i32, %c0_i32_0 : i32, i32
  }
  func.func @transform_10(%arg0: i32, %arg1: i32) -> (i32, i32) {
    %c0_i32 = arith.constant 0 : i32
    %c0_i32_0 = arith.constant 0 : i32
    %c0_i32_1 = arith.constant 0 : i32
    return %c0_i32, %c0_i32_0 : i32, i32
  }
  func.func @transform_11(%arg0: i32, %arg1: i32) -> (i32, i32) {
    %c0_i32 = arith.constant 0 : i32
    %c0_i32_0 = arith.constant 0 : i32
    %c0_i32_1 = arith.constant 0 : i32
    return %c0_i32, %c0_i32_0 : i32, i32
  }
  func.func @transform_12(%arg0: i32, %arg1: i32) -> (i32, i32) {
    %c0_i32 = arith.constant 0 : i32
    %c0_i32_0 = arith.constant 0 : i32
    %c0_i32_1 = arith.constant 0 : i32
    return %c0_i32, %c0_i32_0 : i32, i32
  }
  func.func @transform_13(%arg0: i32, %arg1: i32) -> (i32, i32) {
    %c0_i32 = arith.constant 0 : i32
    %c0_i32_0 = arith.constant 0 : i32
    %c0_i32_1 = arith.constant 0 : i32
    return %c0_i32, %c0_i32_0 : i32, i32
  }
  func.func @transform_14(%arg0: i32, %arg1: i32) -> (i32, i32, i32) {
    %c0_i32 = arith.constant 0 : i32
    %c0_i32_0 = arith.constant 0 : i32
    return %arg0, %arg1, %c0_i32 : i32, i32, i32
  }
}

</mosaic_0001>

<bundles_post_ra>
// kernel: tpu_custom_call.1
= control target key start
LH: loop header
LB: loop body
LE: loop exit
PB: predicated region body
PF: predicated region fallthrough
CT: control target
= control target key end

     0   :  { %s3225_s0 = inlined_call_operand.vmem [shape: f32[2,1,256], index: 0, kind: input, shape index: {}]   ;;  %s3226_s1 = inlined_call_operand.hbm [shape: f32[2,16,512], index: 1, kind: input, shape index: {}]   ;;  %s3227_s2 = inlined_call_operand.vmem [shape: f32[256,256], index: 2, kind: input, shape index: {}]   ;;  %s3228_s3 = inlined_call_operand.hbm [shape: f32[512,256], index: 3, kind: input, shape index: {}]   ;;  %s3229_s4 = inlined_call_operand.vmem [shape: f32[1,256], index: 4, kind: input, shape index: {}]   ;;  %s3230_s5 = inlined_call_operand.hbm [shape: f32[256,128], index: 5, kind: input, shape index: {}]   ;;  %s3231_s6 = inlined_call_operand.hbm [shape: f32[256,128], index: 6, kind: input, shape index: {}]   ;;  %s3232_s7 = inlined_call_operand.hbm [shape: f32[512,128], index: 7, kind: input, shape index: {}]   ;;  %s3233_s8 = inlined_call_operand.vmem [shape: f32[1,128], index: 8, kind: input, shape index: {}]   ;;  %s3234_s9 = inlined_call_operand.vmem [shape: f32[128,64], index: 9, kind: input, shape index: {}]   ;;  %s3235_s10 = inlined_call_operand.vmem [shape: f32[256,64], index: 10, kind: input, shape index: {}]   ;;  %s3236_s11 = inlined_call_operand.vmem [shape: f32[1,64], index: 11, kind: input, shape index: {}]   ;;  %s3237_s12 = inlined_call_operand.vmem [shape: f32[64,6], index: 12, kind: input, shape index: {}]   ;;  %s3238_s13 = inlined_call_operand.vmem [shape: f32[1,6], index: 13, kind: input, shape index: {}]   ;;  %s3239_s14 = inlined_call_operand.vmem [shape: f32[2,16,6], index: 14, kind: output, shape index: {}]  }
   0x1   :  { %3244 = sst [smem:[#allocation16_spill]] %s3228_s3 }
   0x2   :  { %3245 = sst [smem:[#allocation17_spill]] %s3229_s4 }
   0x3   :  { %3246 = sst [smem:[#allocation18_spill]] %s3230_s5 }
   0x4   :  { %3247 = sst [smem:[#allocation19_spill]] %s3231_s6 }
   0x5   :  { %3248 = sst [smem:[#allocation20_spill]] %s3232_s7 }
   0x6   :  { %3249 = sst [smem:[#allocation21_spill]] %s3233_s8 }
   0x7   :  { %3250 = sst [smem:[#allocation22_spill]] %s3236_s11 }
   0x8   :  { %3251 = sst [smem:[#allocation23_spill]] %s3237_s12 }
   0x9   :  { %3252 = sst [smem:[#allocation24_spill]] %s3238_s13 }
   0xa   :  { %3253 = sst [smem:[#allocation25_spill]] %s3239_s14 }
   0xb   :  { %19 = vsyncpa [#allocation3], 0 }
   0xc   :  { %21 = vsyncpa [#allocation3 + $0x1], 0 }
   0xd   :  { %22 = vsyncpa [#allocation5], 0 }
   0xe   :  { %23 = vsyncpa [#allocation8], 0  ;;  %s2579_s29 = smov 0   ;;  %s2581_s30 = smov 0  }
   0xf   :  { %s2583_s15 = smov 0   ;;  %s2585_s16 = smov 0  }
  0x10   :  { %s2587_s17 = smov 0   ;;  %s2589_s18 = smov 0  }
  0x11   :  { %s2591_s19 = smov 0   ;;  %s2593_s20 = smov 0  }
  0x12 LB: > { %3254 = sst [smem:[#allocation13_spill]] %s2475_s16  ;;  %s1885_s21 = sadd.s32 4294967295, %s2491_s20   ;;  %s2491_s20 = sphi %s2593_s20, %s29_s20   ;;  %s2487_s19 = sphi %s2591_s19, %s3282_s19   ;;  %s2483_s18 = sphi %s2589_s18, %s3281_s18   ;;  %s2479_s17 = sphi %s2587_s17, %s3280_s17   ;;  %s2475_s16 = sphi %s2585_s16, %s3279_s16   ;;  %s2471_s15 = sphi %s2583_s15, %s3278_s15   ;;  %s2467_s30 = sphi %s2581_s30, %s3277_s30   ;;  %s2463_s29 = sphi %s2579_s29, %s3276_s29  }
  0x13   : > { %p1887_p0 = scmp.ge.s32.totalorder %s2491_s20, 1  ;;  %p2621_p1 = scmp.eq.s32.totalorder %s1885_s21, 0 }
  0x14   : > { %p380_p2 = scmp.lt.s32.totalorder %s2491_s20, 5  ;;  %s2493_s24 = smov [#allocation4]  }
  0x15   : > { %s395_s25 = sshll.u32 %s2493_s24, 4  ;;  %s2494_s27 = smov [#allocation7]   ;;  %s396_s25 = int_to_ptr.vmem [resolvable:$true] %s395_s25 }
  0x16   : > { %p2626_p3 = pnand %p1887_p0, %p380_p2  ;;  %s424_s28 = sshll.u32 %s2494_s27, 4  ;;  %s425_s28 = int_to_ptr.vmem [resolvable:$true] %s424_s28 }
  0x17   : > { %s2296_s21 = scalar_lea.vmem %s396_s25, 16384  ;;  %p2304_p10 = scmp.lt.s32.totalorder %s396_s25, %s396_s25 }
  0x18   : > { %p2185_p4 = pneg %p2626_p3  ;;  %p2297_p7 = scmp.ne.s32.totalorder %s396_s25, %s2296_s21 }
  0x19   : > { %p2305_p11 = scmp.lt.s32.totalorder %s2296_s21, %s2296_s21 }
  0x1a   : > { %p2634_p5 = pnand %p2185_p4, %p2621_p1 }
  0x1b   : > { %p2306_p12 = por %p2305_p11, %p2304_p10 }
  0x1c   : > { %p2287_p6 = pneg %p2634_p5 }
  0x1e   : > { %p2299_p8 = pnand %p2297_p7, %p2287_p6 }
  0x20   : > { %p2300_p9 = pneg %p2299_p8 }
  0x22   : > { %p2307_p13 = pnand %p2306_p12, %p2300_p9 }
  0x24   : > { %2310 = shalt.err (!%p2307_p13)
}
  0x25   : > { %s2495_s24 = smov 256   ;;  %s2496_s14 = smov 16  }
  0x26   : > { %s3258_s3 = sld [smem:[#allocation16_spill]]  ;;  %s2497_s11 = smov [#allocation6]  }
  0x27   : > { %s411_s16 = sshll.u32 %s2497_s11, 4  ;;  %s2322_s8 = scalar_lea.vmem %s425_s28, 4096  ;;  %s412_s16 = int_to_ptr.vmem [resolvable:$true] %s411_s16 }
  0x28   : > { %p2323_p0 = scmp.ne.s32.totalorder %s425_s28, %s2322_s8  ;;  %p2330_p7 = scmp.lt.s32.totalorder %s425_s28, %s425_s28 }
  0x29   : > { %p2331_p8 = scmp.lt.s32.totalorder %s2322_s8, %s2322_s8 }
  0x2a   : > { %p2325_p2 = pnand %p2323_p0, %p2287_p6 }
  0x2b   : > { %p2332_p9 = por %p2331_p8, %p2330_p7 }
  0x2c   : > { %2188 = dma.hbm_to_vmem [thread:$0]  (!%p2634_p5), %s3258_s3, 16384, %s396_s25, [#allocation5], %s2495_s24, %s2495_s24, %s2496_s14  }
  0x2d   : > { %p2326_p4 = pneg %p2325_p2 }
  0x2f   : > { %p2333_p10 = pnand %p2332_p9, %p2326_p4 }
  0x31   : > { %2336 = shalt.err (!%p2333_p10)
}
  0x32   : > { %s2498_s21 = smov 128   ;;  %s2499_s12 = smov 8  }
  0x33   : > { %s3259_s6 = sld [smem:[#allocation19_spill]]  ;;  %s2348_s11 = scalar_lea.vmem %s412_s16, 4096 }
  0x34   : > { %p2349_p11 = scmp.ne.s32.totalorder %s412_s16, %s2348_s11  ;;  %p2356_p0 = scmp.lt.s32.totalorder %s412_s16, %s412_s16 }
  0x35   : > { %p2357_p2 = scmp.lt.s32.totalorder %s2348_s11, %s2348_s11 }
  0x36   : > { %p2351_p12 = pnand %p2349_p11, %p2287_p6 }
  0x37   : > { %p2358_p4 = por %p2357_p2, %p2356_p0 }
  0x38   : > { %p2352_p13 = pneg %p2351_p12 }
  0x39   : > { %2194 = dma.hbm_to_vmem [thread:$0]  (!%p2634_p5), %s3259_s6, 4096, %s425_s28, [#allocation8], %s2498_s21, %s2498_s21, %s2499_s12  }
  0x3a   : > { %p2359_p7 = pnand %p2358_p4, %p2352_p13 }
  0x3c   : > { %2362 = shalt.err (!%p2359_p7)
}
  0x3d   : > { %s3260_s5 = sld [smem:[#allocation18_spill]]  ;;  %s2500_s28 = smov [#allocation9]  }
  0x3e   : > { %s437_s24 = sshll.u32 %s2500_s28, 4  ;;  %s438_s24 = int_to_ptr.vmem [resolvable:$true] %s437_s24 }
  0x3f   : > { %s2374_s27 = scalar_lea.vmem %s438_s24, 8192  ;;  %p2382_p11 = scmp.lt.s32.totalorder %s438_s24, %s438_s24 }
  0x40   : > { %p2375_p8 = scmp.ne.s32.totalorder %s438_s24, %s2374_s27  ;;  %p2383_p12 = scmp.lt.s32.totalorder %s2374_s27, %s2374_s27 }
  0x42   : > { %p2377_p9 = pnand %p2375_p8, %p2287_p6  ;;  %p2384_p13 = por %p2383_p12, %p2382_p11 }
  0x43   : > { %2191 = dma.hbm_to_vmem [thread:$0]  (!%p2634_p5), %s3260_s5, 4096, %s412_s16, [#allocation5], %s2498_s21, %s2498_s21, %s2499_s12  }
  0x44   : > { %p2378_p10 = pneg %p2377_p9 }
  0x46   : > { %p2385_p0 = pnand %p2384_p13, %p2378_p10 }
  0x48   : > { %2388 = shalt.err (!%p2385_p0)
}
  0x49   : > { %s3261_s7 = sld [smem:[#allocation20_spill]]  ;;  %s38_s16 = sadd.s32 1, %s2483_s18 }
  0x4a   : > { %s41_s26 = sadd.s32 1, %s2487_s19  ;;  %p39_p6 = scmp.ge.s32.totalorder %s38_s16, 2 }
  0x4b   : > { %s76_s11 = sadd.s32 1, %s2471_s15  ;;  %p83_p2 = scmp.ne.s32.totalorder %s2471_s15, %s2467_s30 }
  0x4c   : > { %p84_p4 = scmp.eq.s32.totalorder %s2491_s20, 0  ;;  %s3284_s16 = smov (%p39_p6, %s38_s16), 0 }
  0x4d   : > { %3262 = sst [smem:[#allocation14_spill]] %s3284_s16  ;;  %s3286_s26 = smov (!%p39_p6, %s41_s26), %s2487_s19 }
  0x4e   : > { %s72_s8 = ssub.s32 %s2483_s18, %s3284_s16  ;;  %p2683_p7 = por %p84_p4, %p83_p2 }
  0x4f   : > { %2197 = dma.hbm_to_vmem [thread:$0]  (!%p2634_p5), %s3261_s7, 8192, %s438_s24, [#allocation8], %s2498_s21, %s2498_s21, %s2499_s12  }
  0x50   : > { %p43_p5 = scmp.ge.s32.totalorder %s3286_s26, 2  ;;  %p89_p8 = scmp.ne.s32.totalorder %s2467_s30, %s2463_s29 }
  0x51   : > { %p2206_p9 = scmp.lt.s32.totalorder %s2491_s20, 4  ;;  %s476_s12 = sand.u32 1, %s2471_s15  }
  0x52   : > { %s3288_s26 = smov (%p43_p5, %s3286_s26), 0  ;;  %p2695_p10 = por %p2621_p1, %p89_p8 }
  0x53   : > { %3264 = sst [smem:[#allocation15_spill]] %s3288_s26  ;;  %s71_s28 = ssub.s32 %s2487_s19, %s3288_s26 }
  0x54   : > { %s1893_s24 = sshll.u32 %s476_s12, 5  ;;  %s73_s27 = sor.u32 %s72_s8, %s71_s28 }
  0x55   : > { %p74_p11 = scmp.eq.s32.totalorder %s73_s27, 0  ;;  %s1894_s13 = sshll.u32 %s2483_s18, 2 }
  0x56   : > { %s1895_s14 = sshll.u32 %s2487_s19, 3  ;;  %s480_s3 = scalar_lea.vmem [#allocation2], %s1893_s24 }
  0x57   : > { %s490_s29 = sshll.u32 %s480_s3, 4  ;;  %s486_s6 = sadd.s32 %s1895_s14, %s1894_s13  ;;  %s491_s29 = int_to_ptr.vmem [resolvable:$true] %s490_s29 }
  0x58   : > { %s2704_s5 = scalar_select %p74_p11, %s2471_s15, %s76_s11  }
  0x59   : > { %s1896_s7 = sshll.u32 %s486_s6, 7  ;;  %p2710_p12 = pnand %p2206_p9, %p2683_p7 }
  0x5a   : > { %s488_s8 = scalar_lea.hbm %s3226_s1, %s1896_s7  ;;  %s477_s28 = scalar_lea.sflag [#allocation3], %s476_s12 }
  0x5b   : > { %p2391_p13 = pneg %p2710_p12  ;;  %s2402_s3 = scalar_lea.vmem %s491_s29, 512 }
  0x5c   : > { %p2403_p0 = scmp.ne.s32.totalorder %s491_s29, %s2402_s3  ;;  %s2501_s11 = smov [#allocation2]  }
  0x5d   : > { %s2407_s6 = sshll.u32 %s2501_s11, 4  ;;  %s2408_s6 = int_to_ptr.vmem [resolvable:$false] %s2407_s6 }
  0x5e   : > { %p2405_p6 = pnand %p2403_p0, %p2391_p13  ;;  %s2409_s25 = scalar_lea.vmem %s2408_s6, 1024 }
  0x5f   : > { %p2410_p4 = scmp.lt.s32.totalorder %s491_s29, %s2408_s6  ;;  %p2411_p7 = scmp.lt.s32.totalorder %s2409_s25, %s2402_s3 }
  0x60   : > { %p2406_p2 = pneg %p2405_p6 }
  0x61   : > { %p2412_p5 = por %p2411_p7, %p2410_p4 }
  0x63   : > { %p2413_p8 = pnand %p2412_p5, %p2406_p2 }
  0x65   : > { %2416 = shalt.err (!%p2413_p8)
}
  0x66   : > { %2201 = dma.hbm_to_vmem [thread:$0]  (!%p2710_p12), %s488_s8, 512, %s491_s29, %s477_s28  }
  0x67   : > { %499 = sbr.rel (%p2626_p3) target bundleno = 1045 (0x415), region = 76  ;;  %s501_s4 = sand.u32 (!%p2626_p3), 1, %s2467_s30  }
  0x68   : > { %s1898_s7 = sshll.u32 (!%p2626_p3), %s501_s4, 5  ;;  %s502_s26 = scalar_lea.sflag (!%p2626_p3), [#allocation3], %s501_s4 }
  0x69   : > { %s2724_s12 = scalar_lea.vmem (!%p2626_p3), [#allocation2], %s1898_s7 }
  0x6c   : > { %2450 = dma.done.wait (%p2695_p10), %s502_s26, 512  }
  0x6d   : > { %2452 = vsyncadd (%p2695_p10), %s502_s26, 4294966784 }
  0x6e   : > { %2454 = dma.done.wait (%p2621_p1), [#allocation5], 20480  }
  0x6f   : > { %2456 = vsyncadd (%p2621_p1), [#allocation5], 4294946816 }
  0x70   : > { %2458 = dma.done.wait (%p2621_p1), [#allocation8], 12288  }
  0x71   : > { %2460 = vsyncadd (%p2621_p1), [#allocation8], 4294955008  ;;  %v749_v0 = vld [vmem:[%s3227_s2 + $0xf8] sm:$0xff]  ;;  %v748_v1 = vld [vmem:[%s3227_s2 + $0xf0] sm:$0xff]  ;;  %p573_p1 = scmp.lt.s32.totalorder %s2479_s17, 1  ;;  %s3267_s28 = sld [smem:[#allocation17_spill]] }
  0x72   : > { %v747_v2 = vld [vmem:[%s3227_s2 + $0xe8] sm:$0xff]  ;;  %793 = vmatprep.subr.mxu0 %v749_v0  ;;  %v621_v3 = vld [vmem:[#allocation4 + $0xf8] sm:$0xff]  ;;  %v746_v4 = vld [vmem:[%s3227_s2 + $0xe0] sm:$0xff]  ;;  %vm2503_vm0 = vmmov 0   ;;  %s3268_s23 = sld [smem:[#allocation23_spill]]  ;;  %vm1664_vm1 = vcmask 523264  }
  0x73   : > { %v620_v5 = vld [vmem:[#allocation4 + $0xf0] sm:$0xff]  ;;  %794 = vmatpush1.msra.mxu0 %v748_v1  ;;  %872 = vmatprep.subr.mxu1 %v621_v3  ;;  %v745_v6 = vld [vmem:[%s3227_s2 + $0xd8] sm:$0xff]  ;;  %v619_v7 = vld [vmem:[#allocation4 + $0xe8] sm:$0xff]  ;;  %s3290_s17 = smov (!%p573_p1, %s2479_s17), 1  ;;  %s3269_s22 = sld [smem:[#allocation21_spill]]  ;;  %vm1738_vm2 = vcmask 48128  }
  0x74   : > { %795 = vmatprep.subr.mxu0 %v747_v2  ;;  %873 = vmatpush1.msra.mxu1 %v620_v5  ;;  %v744_v8 = vld [vmem:[%s3227_s2 + $0xd0] sm:$0xff]  ;;  %v618_v9 = vld [vmem:[#allocation4 + $0xe0] sm:$0xff]  ;;  %v617_v10 = vld [vmem:[#allocation4 + $0xd8] sm:$0xff]  ;;  %s1903_s7 = sshll.u32 %s3290_s17, 1  ;;  %s3270_s4 = sld [smem:[#allocation13_spill]] }
  0x75   : > { %796 = vmatpush1.msra.mxu0 %v746_v4  ;;  %874 = vmatprep.subr.mxu1 %v619_v7  ;;  %v743_v11 = vld [vmem:[%s3227_s2 + $0xc8] sm:$0xff]  ;;  %v616_v12 = vld [vmem:[#allocation4 + $0xd0] sm:$0xff]  ;;  %v742_v13 = vld [vmem:[%s3227_s2 + $0xc0] sm:$0xff]  ;;  %s576_s29 = scalar_lea.vmem %s3225_s0, %s1903_s7  ;;  %s3271_s21 = sld [smem:[#allocation22_spill]] }
  0x76   : > { %797 = vmatprep.subr.mxu0 %v745_v6  ;;  %875 = vmatpush1.msra.mxu1 %v618_v9  ;;  %v615_v14 = vld [vmem:[#allocation4 + $0xc8] sm:$0xff]  ;;  %v741_v15 = vld [vmem:[%s3227_s2 + $0xb8] sm:$0xff]  ;;  %v614_v16 = vld [vmem:[#allocation4 + $0xc0] sm:$0xff]  ;;  %s3273_s3 = sld [smem:[#allocation25_spill]] }
  0x77   : > { %798 = vmatpush1.msra.mxu0 %v744_v8  ;;  %876 = vmatprep.subr.mxu1 %v617_v10  ;;  %v740_v17 = vld [vmem:[%s3227_s2 + $0xb0] sm:$0xff]  ;;  %v613_v18 = vld [vmem:[#allocation4 + $0xb8] sm:$0xff]  ;;  %v739_v19 = vld [vmem:[%s3227_s2 + $0xa8] sm:$0xff] }
  0x78   : > { %799 = vmatprep.subr.mxu0 %v743_v11  ;;  %877 = vmatpush1.msra.mxu1 %v616_v12  ;;  %v612_v20 = vld [vmem:[#allocation4 + $0xb0] sm:$0xff]  ;;  %v738_v21 = vld [vmem:[%s3227_s2 + $0xa0] sm:$0xff]  ;;  %v611_v22 = vld [vmem:[#allocation4 + $0xa8] sm:$0xff] }
  0x79   : > { %800 = vmatpush1.msra.mxu0 %v742_v13  ;;  %878 = vmatprep.subr.mxu1 %v615_v14  ;;  %v737_v23 = vld [vmem:[%s3227_s2 + $0x98] sm:$0xff]  ;;  %v610_v24 = vld [vmem:[#allocation4 + $0xa0] sm:$0xff]  ;;  %v736_v25 = vld [vmem:[%s3227_s2 + $0x90] sm:$0xff] }
  0x7a   : > { %801 = vmatprep.subr.mxu0 %v741_v15  ;;  %879 = vmatpush1.msra.mxu1 %v614_v16  ;;  %v609_v26 = vld [vmem:[#allocation4 + $0x98] sm:$0xff]  ;;  %v735_v27 = vld [vmem:[%s3227_s2 + $0x88] sm:$0xff]  ;;  %v608_v28 = vld [vmem:[#allocation4 + $0x90] sm:$0xff]  ;;  %p579_p3 = scmp.lt.s32.totalorder %s3270_s4, 1 }
  0x7b   : > { %802 = vmatpush1.msra.mxu0 %v740_v17  ;;  %880 = vmatprep.subr.mxu1 %v613_v18  ;;  %v734_v29 = vld [vmem:[%s3227_s2 + $0x80] sm:$0xff]  ;;  %v607_v30 = vld [vmem:[#allocation4 + $0x88] sm:$0xff]  ;;  %v733_v31 = vld [vmem:[%s3227_s2 + $0x78] sm:$0xff] }
  0x7c   : > { %803 = vmatprep.subr.mxu0 %v739_v19  ;;  %881 = vmatpush1.msra.mxu1 %v612_v20  ;;  %v606_v32 = vld [vmem:[#allocation4 + $0x80] sm:$0xff]  ;;  %v732_v33 = vld [vmem:[%s3227_s2 + $0x70] sm:$0xff]  ;;  %v605_v34 = vld [vmem:[#allocation4 + $0x78] sm:$0xff]  ;;  %s3292_s4 = smov (!%p579_p3, %s3270_s4), 1 }
  0x7d   : > { %804 = vmatpush1.msra.mxu0 %v738_v21  ;;  %882 = vmatprep.subr.mxu1 %v611_v22  ;;  %v731_v35 = vld [vmem:[%s3227_s2 + $0x68] sm:$0xff]  ;;  %v604_v36 = vld [vmem:[#allocation4 + $0x70] sm:$0xff]  ;;  %v730_v37 = vld [vmem:[%s3227_s2 + $0x60] sm:$0xff]  ;;  %s582_s13 = sadd.s32 %s1903_s7, %s3292_s4 }
  0x7e   : > { %805 = vmatprep.subr.mxu0 %v737_v23  ;;  %883 = vmatpush1.msra.mxu1 %v610_v24  ;;  %v603_v38 = vld [vmem:[#allocation4 + $0x68] sm:$0xff]  ;;  %v729_v39 = vld [vmem:[%s3227_s2 + $0x58] sm:$0xff]  ;;  %v602_v40 = vld [vmem:[#allocation4 + $0x60] sm:$0xff]  ;;  %s1905_s14 = sshll.u32 %s582_s13, 3 }
  0x7f   : > { %806 = vmatpush1.msra.mxu0 %v736_v25  ;;  %884 = vmatprep.subr.mxu1 %v609_v26  ;;  %v728_v41 = vld [vmem:[%s3227_s2 + $0x50] sm:$0xff]  ;;  %v601_v42 = vld [vmem:[#allocation4 + $0x58] sm:$0xff]  ;;  %v727_v43 = vld [vmem:[%s3227_s2 + $0x48] sm:$0xff]  ;;  %s584_s11 = scalar_lea.vmem %s3273_s3, %s1905_s14 }
  0x80   : > { %807 = vmatprep.subr.mxu0 %v735_v27  ;;  %885 = vmatpush1.msra.mxu1 %v608_v28  ;;  %v600_v44 = vld [vmem:[#allocation4 + $0x50] sm:$0xff]  ;;  %v726_v45 = vld [vmem:[%s3227_s2 + $0x40] sm:$0xff]  ;;  %v599_v46 = vld [vmem:[#allocation4 + $0x48] sm:$0xff] }
  0x81   : > { %808 = vmatpush1.msra.mxu0 %v734_v29  ;;  %886 = vmatprep.subr.mxu1 %v607_v30  ;;  %v725_v47 = vld [vmem:[%s3227_s2 + $0x38] sm:$0xff]  ;;  %v598_v48 = vld [vmem:[#allocation4 + $0x40] sm:$0xff]  ;;  %v724_v49 = vld [vmem:[%s3227_s2 + $0x30] sm:$0xff] }
  0x82   : > { %809 = vmatprep.subr.mxu0 %v733_v31  ;;  %887 = vmatpush1.msra.mxu1 %v606_v32  ;;  %v597_v50 = vld [vmem:[#allocation4 + $0x38] sm:$0xff]  ;;  %v723_v51 = vld [vmem:[%s3227_s2 + $0x28] sm:$0xff]  ;;  %v596_v52 = vld [vmem:[#allocation4 + $0x30] sm:$0xff] }
  0x83   : > { %810 = vmatpush1.msra.mxu0 %v732_v33  ;;  %888 = vmatprep.subr.mxu1 %v605_v34  ;;  %v722_v53 = vld [vmem:[%s3227_s2 + $0x20] sm:$0xff]  ;;  %v595_v54 = vld [vmem:[#allocation4 + $0x28] sm:$0xff]  ;;  %v721_v55 = vld [vmem:[%s3227_s2 + $0x18] sm:$0xff] }
  0x84   : > { %811 = vmatprep.subr.mxu0 %v731_v35  ;;  %889 = vmatpush1.msra.mxu1 %v604_v36  ;;  %v594_v56 = vld [vmem:[#allocation4 + $0x20] sm:$0xff]  ;;  %v720_v57 = vld [vmem:[%s3227_s2 + $0x10] sm:$0xff]  ;;  %v593_v58 = vld [vmem:[#allocation4 + $0x18] sm:$0xff]  ;;  %v783_v35 = vlaneseq }
  0x85   : > { %812 = vmatpush1.msra.mxu0 %v730_v37  ;;  %890 = vmatprep.subr.mxu1 %v603_v38  ;;  %v719_v59 = vld [vmem:[%s3227_s2 + $0x8] sm:$0xff]  ;;  %v592_v60 = vld [vmem:[#allocation4 + $0x10] sm:$0xff]  ;;  %v718_v61 = vld [vmem:[%s3227_s2] sm:$0xff] }
  0x86   : > { %813 = vmatprep.subr.mxu0 %v729_v39  ;;  %891 = vmatpush1.msra.mxu1 %v602_v40  ;;  %v591_v62 = vld [vmem:[#allocation4 + $0x8] sm:$0xff]  ;;  %v781_v63 = vld [vmem:[%s3227_s2 + $0x1f8] sm:$0xff]  ;;  %v590_v0 = vld [vmem:[#allocation4] sm:$0xff] }
  0x87   : > { %814 = vmatpush1.msra.mxu0 %v728_v41  ;;  %892 = vmatprep.subr.mxu1 %v601_v42  ;;  %v780_v1 = vld [vmem:[%s3227_s2 + $0x1f0] sm:$0xff]  ;;  %v653_v2 = vld [vmem:[#allocation4 + $0x1f8] sm:$0xff]  ;;  %v779_v3 = vld [vmem:[%s3227_s2 + $0x1e8] sm:$0xff] }
  0x88   : > { %815 = vmatprep.subr.mxu0 %v727_v43  ;;  %893 = vmatpush1.msra.mxu1 %v600_v44  ;;  %v652_v4 = vld [vmem:[#allocation4 + $0x1f0] sm:$0xff]  ;;  %v778_v5 = vld [vmem:[%s3227_s2 + $0x1e0] sm:$0xff]  ;;  %v651_v6 = vld [vmem:[#allocation4 + $0x1e8] sm:$0xff]  ;;  %v2907_v44 = vshrl.u32 %v783_v35, 7 }
  0x89   : > { %816 = vmatpush1.msra.mxu0 %v726_v45  ;;  %894 = vmatprep.subr.mxu1 %v599_v46  ;;  %v777_v7 = vld [vmem:[%s3227_s2 + $0x1d8] sm:$0xff]  ;;  %v650_v8 = vld [vmem:[#allocation4 + $0x1e0] sm:$0xff]  ;;  %v776_v9 = vld [vmem:[%s3227_s2 + $0x1d0] sm:$0xff] }
  0x8a   : > { %817 = vmatprep.subr.mxu0 %v725_v47  ;;  %895 = vmatpush1.msra.mxu1 %v598_v48  ;;  %v649_v10 = vld [vmem:[#allocation4 + $0x1d8] sm:$0xff]  ;;  %v775_v11 = vld [vmem:[%s3227_s2 + $0x1c8] sm:$0xff]  ;;  %v648_v12 = vld [vmem:[#allocation4 + $0x1d0] sm:$0xff] }
  0x8b   : > { %818 = vmatpush1.msra.mxu0 %v724_v49  ;;  %896 = vmatprep.subr.mxu1 %v597_v50  ;;  %v774_v13 = vld [vmem:[%s3227_s2 + $0x1c0] sm:$0xff]  ;;  %v647_v14 = vld [vmem:[#allocation4 + $0x1c8] sm:$0xff]  ;;  %v773_v15 = vld [vmem:[%s3227_s2 + $0x1b8] sm:$0xff] }
  0x8c   : > { %819 = vmatprep.subr.mxu0 %v723_v51  ;;  %897 = vmatpush1.msra.mxu1 %v596_v52  ;;  %v646_v16 = vld [vmem:[#allocation4 + $0x1c0] sm:$0xff]  ;;  %v772_v17 = vld [vmem:[%s3227_s2 + $0x1b0] sm:$0xff]  ;;  %v645_v18 = vld [vmem:[#allocation4 + $0x1b8] sm:$0xff] }
  0x8d   : > { %820 = vmatpush1.msra.mxu0 %v722_v53  ;;  %898 = vmatprep.subr.mxu1 %v595_v54  ;;  %v771_v19 = vld [vmem:[%s3227_s2 + $0x1a8] sm:$0xff]  ;;  %v644_v20 = vld [vmem:[#allocation4 + $0x1b0] sm:$0xff]  ;;  %v770_v21 = vld [vmem:[%s3227_s2 + $0x1a0] sm:$0xff]  ;;  %v789_v53 = vsub.s32 1, %v2907_v44 }
  0x8e   : > { %821 = vmatprep.subr.mxu0 %v721_v55  ;;  %899 = vmatpush1.msra.mxu1 %v594_v56  ;;  %v643_v22 = vld [vmem:[#allocation4 + $0x1a8] sm:$0xff]  ;;  %v769_v23 = vld [vmem:[%s3227_s2 + $0x198] sm:$0xff]  ;;  %v642_v24 = vld [vmem:[#allocation4 + $0x1a0] sm:$0xff] }
  0x8f   : > { %822 = vmatpush1.msra.mxu0 %v720_v57  ;;  %900 = vmatprep.subr.mxu1 %v593_v58  ;;  %v768_v25 = vld [vmem:[%s3227_s2 + $0x190] sm:$0xff]  ;;  %v641_v26 = vld [vmem:[#allocation4 + $0x198] sm:$0xff]  ;;  %v767_v27 = vld [vmem:[%s3227_s2 + $0x188] sm:$0xff] }
  0x90   : > { %823 = vmatprep.subr.mxu0 %v719_v59  ;;  %901 = vmatpush1.msra.mxu1 %v592_v60  ;;  %v640_v28 = vld [vmem:[#allocation4 + $0x190] sm:$0xff]  ;;  %v766_v29 = vld [vmem:[%s3227_s2 + $0x180] sm:$0xff]  ;;  %v639_v30 = vld [vmem:[#allocation4 + $0x188] sm:$0xff]  ;;  %v2934_v59 = vsub.s32 0, %v2907_v44 }
  0x91   : > { %824 = vmatpush1.msra.mxu0 %v718_v61  ;;  %902 = vmatprep.subr.mxu1 %v591_v62  ;;  %v765_v31 = vld [vmem:[%s3227_s2 + $0x178] sm:$0xff]  ;;  %v638_v32 = vld [vmem:[#allocation4 + $0x180] sm:$0xff]  ;;  %v764_v33 = vld [vmem:[%s3227_s2 + $0x170] sm:$0xff] }
  0x92   : > { %825 = vmatprep.subr.mxu0 %v781_v63  ;;  %903 = vmatpush1.msra.mxu1 %v590_v0  ;;  %v637_v34 = vld [vmem:[#allocation4 + $0x178] sm:$0xff]  ;;  %v763_v36 = vld [vmem:[%s3227_s2 + $0x168] sm:$0xff]  ;;  %v636_v37 = vld [vmem:[#allocation4 + $0x170] sm:$0xff] }
  0x93   : > { %826 = vmatpush2.msra.mxu0 %v780_v1  ;;  %904 = vmatprep.subr.mxu1 %v653_v2  ;;  %v762_v38 = vld [vmem:[%s3227_s2 + $0x160] sm:$0xff]  ;;  %v635_v39 = vld [vmem:[#allocation4 + $0x168] sm:$0xff]  ;;  %v761_v40 = vld [vmem:[%s3227_s2 + $0x158] sm:$0xff] }
  0x94   : > { %827 = vmatprep.subr.mxu0 %v779_v3  ;;  %905 = vmatpush2.msra.mxu1 %v652_v4  ;;  %v634_v41 = vld [vmem:[#allocation4 + $0x160] sm:$0xff]  ;;  %v760_v42 = vld [vmem:[%s3227_s2 + $0x150] sm:$0xff]  ;;  %v633_v43 = vld [vmem:[#allocation4 + $0x158] sm:$0xff] }
  0x95   : > { %828 = vmatpush2.msra.mxu0 %v778_v5  ;;  %906 = vmatprep.subr.mxu1 %v651_v6  ;;  %v759_v45 = vld [vmem:[%s3227_s2 + $0x148] sm:$0xff]  ;;  %v632_v46 = vld [vmem:[#allocation4 + $0x150] sm:$0xff]  ;;  %v758_v47 = vld [vmem:[%s3227_s2 + $0x140] sm:$0xff] }
  0x96   : > { %829 = vmatprep.subr.mxu0 %v777_v7  ;;  %907 = vmatpush2.msra.mxu1 %v650_v8  ;;  %v631_v48 = vld [vmem:[#allocation4 + $0x148] sm:$0xff]  ;;  %v757_v49 = vld [vmem:[%s3227_s2 + $0x138] sm:$0xff]  ;;  %v630_v50 = vld [vmem:[#allocation4 + $0x140] sm:$0xff] }
  0x97   : > { %830 = vmatpush2.msra.mxu0 %v776_v9  ;;  %908 = vmatprep.subr.mxu1 %v649_v10  ;;  %v756_v51 = vld [vmem:[%s3227_s2 + $0x130] sm:$0xff]  ;;  %v629_v52 = vld [vmem:[#allocation4 + $0x138] sm:$0xff]  ;;  %v755_v54 = vld [vmem:[%s3227_s2 + $0x128] sm:$0xff] }
  0x98   : > { %831 = vmatprep.subr.mxu0 %v775_v11  ;;  %909 = vmatpush2.msra.mxu1 %v648_v12  ;;  %v628_v55 = vld [vmem:[#allocation4 + $0x130] sm:$0xff]  ;;  %v589_v56 = vld [vmem:[%s576_s29] sm:$0x3]  ;;  %v627_v58 = vld [vmem:[#allocation4 + $0x128] sm:$0xff] }
  0x99   : > { %832 = vmatpush2.msra.mxu0 %v774_v13  ;;  %910 = vmatprep.subr.mxu1 %v647_v14  ;;  %v754_v57 = vld [vmem:[%s3227_s2 + $0x120] sm:$0xff]  ;;  %v753_v60 = vld [vmem:[%s3227_s2 + $0x118] sm:$0xff]  ;;  %v752_v62 = vld [vmem:[%s3227_s2 + $0x110] sm:$0xff]  ;;  %v2944_v0 = vrot.slane %v589_v56, %v789_v53  ;;  %v2953_v3 = vrot.slane %v589_v56, %v2934_v59 }
  0x9a   : > { %833 = vmatprep.subr.mxu0 %v773_v15  ;;  %911 = vmatpush2.msra.mxu1 %v646_v16  ;;  %v626_v61 = vld [vmem:[#allocation4 + $0x120] sm:$0xff]  ;;  %v625_v63 = vld [vmem:[#allocation4 + $0x118] sm:$0xff]  ;;  %v751_v1 = vld [vmem:[%s3227_s2 + $0x108] sm:$0xff] }
  0x9b   : > { %834 = vmatpush2.msra.mxu0 %v772_v17  ;;  %912 = vmatprep.subr.mxu1 %v645_v18  ;;  %v750_v2 = vld [vmem:[%s3227_s2 + $0x100] sm:$0xff]  ;;  %v624_v4 = vld [vmem:[#allocation4 + $0x110] sm:$0xff]  ;;  %v623_v5 = vld [vmem:[#allocation4 + $0x108] sm:$0xff] }
  0x9c   : > { %835 = vmatprep.subr.mxu0 %v771_v19  ;;  %913 = vmatpush2.msra.mxu1 %v644_v20  ;;  %v685_v6 = vld [vmem:[#allocation4 + $0x2f8] sm:$0xff]  ;;  %v622_v7 = vld [vmem:[#allocation4 + $0x100] sm:$0xff]  ;;  %v2957_v8 = vld [vmem:[%s2724_s12 + $0x8] sm:$0xff] }
  0x9d   : > { %836 = vmatpush2.msra.mxu0 %v770_v21  ;;  %914 = vmatprep.subr.mxu1 %v643_v22  ;;  %v684_v9 = vld [vmem:[#allocation4 + $0x2f0] sm:$0xff]  ;;  %v2961_v10 = vld [vmem:[%s2724_s12] sm:$0xff]  ;;  %v683_v11 = vld [vmem:[#allocation4 + $0x2e8] sm:$0xff] }
  0x9e   : > { %837 = vmatprep.subr.mxu0 %v769_v23  ;;  %915 = vmatpush2.msra.mxu1 %v642_v24  ;;  %v682_v12 = vld [vmem:[#allocation4 + $0x2e0] sm:$0xff]  ;;  %v2964_v13 = vld [vmem:[%s2724_s12 + $0x18] sm:$0xff]  ;;  %v680_v16 = vld [vmem:[#allocation4 + $0x2d0] sm:$0xff] }
  0x9f   : > { %838 = vmatpush2.msra.mxu0 %v768_v25  ;;  %916 = vmatprep.subr.mxu1 %v641_v26  ;;  %v681_v14 = vld [vmem:[#allocation4 + $0x2d8] sm:$0xff]  ;;  %v679_v18 = vld [vmem:[#allocation4 + $0x2c8] sm:$0xff]  ;;  %v1092_v19 = vld [vmem:[#allocation9 + $0xf0] sm:$0xff] }
  0xa0   : > { %839 = vmatprep.subr.mxu0 %v767_v27  ;;  %917 = vmatpush2.msra.mxu1 %v640_v28  ;;  %v1093_v15 = vld [vmem:[#allocation9 + $0xf8] sm:$0xff]  ;;  %v678_v20 = vld [vmem:[#allocation4 + $0x2c0] sm:$0xff]  ;;  %v1076_v21 = vld [vmem:[#allocation9 + $0x70] sm:$0xff] }
  0xa1   : > { %840 = vmatpush2.msra.mxu0 %v766_v29  ;;  %918 = vmatprep.subr.mxu1 %v639_v30  ;;  %v1077_v17 = vld [vmem:[#allocation9 + $0x78] sm:$0xff]  ;;  %v1091_v23 = vld [vmem:[#allocation9 + $0xe8] sm:$0xff]  ;;  %v676_v24 = vld [vmem:[#allocation4 + $0x2b0] sm:$0xff] }
  0xa2   : > { %841 = vmatprep.subr.mxu0 %v765_v31  ;;  %919 = vmatpush2.msra.mxu1 %v638_v32  ;;  %v677_v22 = vld [vmem:[#allocation4 + $0x2b8] sm:$0xff]  ;;  %v1075_v25 = vld [vmem:[#allocation9 + $0x68] sm:$0xff]  ;;  %v1090_v27 = vld [vmem:[#allocation9 + $0xe0] sm:$0xff] }
  0xa3   : > { %842 = vmatpush2.msra.mxu0 %v764_v33  ;;  %920 = vmatprep.subr.mxu1 %v637_v34  ;;  %v675_v26 = vld [vmem:[#allocation4 + $0x2a8] sm:$0xff]  ;;  %v674_v28 = vld [vmem:[#allocation4 + $0x2a0] sm:$0xff]  ;;  %v673_v30 = vld [vmem:[#allocation4 + $0x298] sm:$0xff] }
  0xa4   : > { %843 = vmatprep.subr.mxu0 %v763_v36  ;;  %921 = vmatpush2.msra.mxu1 %v636_v37  ;;  %v1074_v29 = vld [vmem:[#allocation9 + $0x60] sm:$0xff]  ;;  %v1089_v31 = vld [vmem:[#allocation9 + $0xd8] sm:$0xff]  ;;  %v672_v32 = vld [vmem:[#allocation4 + $0x290] sm:$0xff] }
  0xa5   : > { %844 = vmatpush2.msra.mxu0 %v762_v38  ;;  %922 = vmatprep.subr.mxu1 %v635_v39  ;;  %v1073_v33 = vld [vmem:[#allocation9 + $0x58] sm:$0xff]  ;;  %v671_v34 = vld [vmem:[#allocation4 + $0x288] sm:$0xff]  ;;  %v1088_v35 = vld [vmem:[#allocation9 + $0xd0] sm:$0xff] }
  0xa6   : > { %845 = vmatprep.subr.mxu0 %v761_v40  ;;  %923 = vmatpush2.msra.mxu1 %v634_v41  ;;  %v670_v36 = vld [vmem:[#allocation4 + $0x280] sm:$0xff]  ;;  %v1072_v37 = vld [vmem:[#allocation9 + $0x50] sm:$0xff]  ;;  %v669_v38 = vld [vmem:[#allocation4 + $0x278] sm:$0xff] }
  0xa7   : > { %846 = vmatpush2.msra.mxu0 %v760_v42  ;;  %924 = vmatprep.subr.mxu1 %v633_v43  ;;  %v1087_v39 = vld [vmem:[#allocation9 + $0xc8] sm:$0xff]  ;;  %v668_v40 = vld [vmem:[#allocation4 + $0x270] sm:$0xff]  ;;  %v1086_v43 = vld [vmem:[#allocation9 + $0xc0] sm:$0xff] }
  0xa8   : > { %847 = vmatprep.subr.mxu0 %v759_v45  ;;  %925 = vmatpush2.msra.mxu1 %v632_v46  ;;  %v1071_v41 = vld [vmem:[#allocation9 + $0x48] sm:$0xff]  ;;  %v666_v45 = vld [vmem:[#allocation4 + $0x260] sm:$0xff]  ;;  %v661_v56 = vld [vmem:[#allocation4 + $0x238] sm:$0xff] }
  0xa9   : > { %848 = vmatpush2.msra.mxu0 %v758_v47  ;;  %926 = vmatprep.subr.mxu1 %v631_v48  ;;  %v667_v42 = vld [vmem:[#allocation4 + $0x268] sm:$0xff]  ;;  %v1070_v46 = vld [vmem:[#allocation9 + $0x40] sm:$0xff]  ;;  %v665_v47 = vld [vmem:[#allocation4 + $0x258] sm:$0xff] }
  0xaa   : > { %849 = vmatprep.subr.mxu0 %v757_v49  ;;  %927 = vmatpush2.msra.mxu1 %v630_v50  ;;  %v1085_v48 = vld [vmem:[#allocation9 + $0xb8] sm:$0xff]  ;;  %v664_v49 = vld [vmem:[#allocation4 + $0x250] sm:$0xff] }
  0xab   : > { %850 = vmatpush2.msra.mxu0 %v756_v51  ;;  %928 = vmatprep.subr.mxu1 %v629_v52  ;;  %v1069_v50 = vld [vmem:[#allocation9 + $0x38] sm:$0xff]  ;;  %v663_v51 = vld [vmem:[#allocation4 + $0x248] sm:$0xff]  ;;  %v1084_v52 = vld [vmem:[#allocation9 + $0xb0] sm:$0xff] }
  0xac   : > { %851 = vmatprep.subr.mxu0 %v755_v54  ;;  %929 = vmatpush2.msra.mxu1 %v628_v55  ;;  %v662_v54 = vld [vmem:[#allocation4 + $0x240] sm:$0xff]  ;;  %v1068_v55 = vld [vmem:[#allocation9 + $0x30] sm:$0xff] }
  0xad   : > { %852 = vmatpush2.msra.mxu0 %v754_v57  ;;  %930 = vmatprep.subr.mxu1 %v627_v58  ;;  %v1083_v57 = vld [vmem:[#allocation9 + $0xa8] sm:$0xff]  ;;  %v660_v58 = vld [vmem:[#allocation4 + $0x230] sm:$0xff] }
  0xae   : > { %853 = vmatprep.subr.mxu0 %v753_v60  ;;  %931 = vmatpush2.msra.mxu1 %v626_v61  ;;  %v1067_v60 = vld [vmem:[#allocation9 + $0x28] sm:$0xff]  ;;  %v1482_v44 = vld [vmem:[%s3235_s10 + $0x70] sm:$0xff] }
  0xaf   : > { %854 = vmatpush2.msra.mxu0 %v752_v62  ;;  %932 = vmatprep.subr.mxu1 %v625_v63  ;;  %v659_v61 = vld [vmem:[#allocation4 + $0x228] sm:$0xff]  ;;  %v1082_v62 = vld [vmem:[#allocation9 + $0xa0] sm:$0xff] }
  0xb0   : > { %855 = vmatprep.subr.mxu0 %v751_v1  ;;  %857 = vmatprep.mubr.f32.mxu0 %v2944_v0  ;;  %v658_v63 = vld [vmem:[#allocation4 + $0x220] sm:$0xff] }
  0xb1   : > { %856 = vmatpush2.msra.mxu0 %v750_v2  ;;  %933 = vmatpush2.msra.mxu1 %v624_v4  ;;  %v1066_v1 = vld [vmem:[#allocation9 + $0x20] sm:$0xff]  ;;  %v657_v2 = vld [vmem:[#allocation4 + $0x218] sm:$0xff] }
  0xb2   : > { %858 = vmatmul.mubr.f32.vlgmr.msra.gmra.mxu0 %v2953_v3  ;;  %934 = vmatprep.subr.mxu1 %v623_v5  ;;  %v1081_v4 = vld [vmem:[#allocation9 + $0x98] sm:$0xff]  ;;  %v656_v5 = vld [vmem:[#allocation4 + $0x210] sm:$0xff] }
  0xb3   : > { %943 = vmatprep.subr.mxu0 %v685_v6  ;;  %935 = vmatpush2.msra.mxu1 %v622_v7  ;;  %v1065_v6 = vld [vmem:[#allocation9 + $0x18] sm:$0xff]  ;;  %v655_v7 = vld [vmem:[#allocation4 + $0x208] sm:$0xff] }
  0xb4   : > { %936 = vmatprep.mubr.f32.mxu1 %v2957_v8  ;;  %944 = vmatpush1.msra.mxu0 %v684_v9  ;;  %v1080_v9 = vld [vmem:[#allocation9 + $0x90] sm:$0xff] }
  0xb5   : > { %937 = vmatmul.mubr.f32.vlgmr.msra.gmra.mxu1 %v2961_v10  ;;  %945 = vmatprep.subr.mxu0 %v683_v11  ;;  %v654_v11 = vld [vmem:[#allocation4 + $0x200] sm:$0xff] }
  0xb6   : > { %946 = vmatpush1.msra.mxu0 %v682_v12  ;;  %1007 = vmatprep.mubr.f32.mxu0 %v2964_v13  ;;  %v1064_v12 = vld [vmem:[#allocation9 + $0x10] sm:$0xff] }
  0xb7   : > { %947 = vmatprep.subr.mxu0 %v681_v14  ;;  %1912 = vmatprep.subr.mxu1 %v1093_v15  ;;  %v717_v14 = vld [vmem:[#allocation4 + $0x3f8] sm:$0xff]  ;;  %v1079_v15 = vld [vmem:[#allocation9 + $0x88] sm:$0xff] }
  0xb8   : > { %948 = vmatpush1.msra.mxu0 %v680_v16  ;;  %1913 = vmatpush3.msra.mxu1 %v1077_v17  ;;  %v716_v16 = vld [vmem:[#allocation4 + $0x3f0] sm:$0xff]  ;;  %v1063_v17 = vld [vmem:[#allocation9 + $0x8] sm:$0xff] }
  0xb9   : > { %949 = vmatprep.subr.mxu0 %v679_v18  ;;  %1914 = vmatprep.subr.mxu1 %v1092_v19  ;;  %v715_v18 = vld [vmem:[#allocation4 + $0x3e8] sm:$0xff]  ;;  %v1078_v19 = vld [vmem:[#allocation9 + $0x80] sm:$0xff] }
  0xba   : > { %950 = vmatpush1.msra.mxu0 %v678_v20  ;;  %1915 = vmatpush3.msra.mxu1 %v1076_v21  ;;  %v714_v20 = vld [vmem:[#allocation4 + $0x3e0] sm:$0xff] }
  0xbb   : > { %951 = vmatprep.subr.mxu0 %v677_v22  ;;  %1916 = vmatprep.subr.mxu1 %v1091_v23  ;;  %v1062_v21 = vld [vmem:[#allocation9] sm:$0xff]  ;;  %v713_v22 = vld [vmem:[#allocation4 + $0x3d8] sm:$0xff]  ;;  %v712_v23 = vld [vmem:[#allocation4 + $0x3d0] sm:$0xff] }
  0xbc   : > { %952 = vmatpush1.msra.mxu0 %v676_v24  ;;  %1917 = vmatpush3.msra.mxu1 %v1075_v25  ;;  %v1125_v24 = vld [vmem:[#allocation9 + $0x1f8] sm:$0xff]  ;;  %v711_v25 = vld [vmem:[#allocation4 + $0x3c8] sm:$0xff] }
  0xbd   : > { %953 = vmatprep.subr.mxu0 %v675_v26  ;;  %1918 = vmatprep.subr.mxu1 %v1090_v27  ;;  %v710_v26 = vld [vmem:[#allocation4 + $0x3c0] sm:$0xff]  ;;  %v1109_v27 = vld [vmem:[#allocation9 + $0x178] sm:$0xff] }
  0xbe   : > { %954 = vmatpush1.msra.mxu0 %v674_v28  ;;  %1919 = vmatpush3.msra.mxu1 %v1074_v29  ;;  %v709_v28 = vld [vmem:[#allocation4 + $0x3b8] sm:$0xff]  ;;  %v1124_v29 = vld [vmem:[#allocation9 + $0x1f0] sm:$0xff] }
  0xbf   : > { %955 = vmatprep.subr.mxu0 %v673_v30  ;;  %1920 = vmatprep.subr.mxu1 %v1089_v31  ;;  %v708_v30 = vld [vmem:[#allocation4 + $0x3b0] sm:$0xff] }
  0xc0   : > { %956 = vmatpush1.msra.mxu0 %v672_v32  ;;  %1921 = vmatpush3.msra.mxu1 %v1073_v33  ;;  %v1108_v31 = vld [vmem:[#allocation9 + $0x170] sm:$0xff]  ;;  %v707_v32 = vld [vmem:[#allocation4 + $0x3a8] sm:$0xff] }
  0xc1   : > { %957 = vmatprep.subr.mxu0 %v671_v34  ;;  %1922 = vmatprep.subr.mxu1 %v1088_v35  ;;  %v1123_v33 = vld [vmem:[#allocation9 + $0x1e8] sm:$0xff]  ;;  %v706_v34 = vld [vmem:[#allocation4 + $0x3a0] sm:$0xff] }
  0xc2   : > { %958 = vmatpush1.msra.mxu0 %v670_v36  ;;  %1923 = vmatpush3.msra.mxu1 %v1072_v37  ;;  %v1107_v35 = vld [vmem:[#allocation9 + $0x168] sm:$0xff]  ;;  %v1122_v36 = vld [vmem:[#allocation9 + $0x1e0] sm:$0xff]  ;;  %v704_v37 = vld [vmem:[#allocation4 + $0x390] sm:$0xff] }
  0xc3   : > { %959 = vmatprep.subr.mxu0 %v669_v38  ;;  %1924 = vmatprep.subr.mxu1 %v1087_v39  ;;  %v1106_v38 = vld [vmem:[#allocation9 + $0x160] sm:$0xff]  ;;  %v703_v39 = vld [vmem:[#allocation4 + $0x388] sm:$0xff] }
  0xc4   : > { %960 = vmatpush1.msra.mxu0 %v668_v40  ;;  %1925 = vmatpush3.msra.mxu1 %v1071_v41  ;;  %v702_v40 = vld [vmem:[#allocation4 + $0x380] sm:$0xff]  ;;  %v1105_v41 = vld [vmem:[#allocation9 + $0x158] sm:$0xff] }
  0xc5   : > { %961 = vmatprep.subr.mxu0 %v667_v42  ;;  %1926 = vmatprep.subr.mxu1 %v1086_v43  ;;  %v701_v42 = vld [vmem:[#allocation4 + $0x378] sm:$0xff]  ;;  %v1120_v43 = vld [vmem:[#allocation9 + $0x1d0] sm:$0xff] }
  0xc6   : > { %962 = vmatpush1.msra.mxu0 %v666_v45  ;;  %1927 = vmatpush3.msra.mxu1 %v1070_v46  ;;  %v700_v45 = vld [vmem:[#allocation4 + $0x370] sm:$0xff] }
  0xc7   : > { %963 = vmatprep.subr.mxu0 %v665_v47  ;;  %1928 = vmatprep.subr.mxu1 %v1085_v48  ;;  %v1104_v46 = vld [vmem:[#allocation9 + $0x150] sm:$0xff]  ;;  %v699_v47 = vld [vmem:[#allocation4 + $0x368] sm:$0xff] }
  0xc8   : > { %964 = vmatpush1.msra.mxu0 %v664_v49  ;;  %1929 = vmatpush3.msra.mxu1 %v1069_v50  ;;  %v1119_v48 = vld [vmem:[#allocation9 + $0x1c8] sm:$0xff]  ;;  %v698_v49 = vld [vmem:[#allocation4 + $0x360] sm:$0xff] }
  0xc9   : > { %965 = vmatprep.subr.mxu0 %v663_v51  ;;  %1930 = vmatprep.subr.mxu1 %v1084_v52  ;;  %v1103_v50 = vld [vmem:[#allocation9 + $0x148] sm:$0xff]  ;;  %v697_v51 = vld [vmem:[#allocation4 + $0x358] sm:$0xff]  ;;  %v1118_v52 = vld [vmem:[#allocation9 + $0x1c0] sm:$0xff] }
  0xca   : > { %966 = vmatpush1.msra.mxu0 %v662_v54  ;;  %1931 = vmatpush3.msra.mxu1 %v1068_v55  ;;  %v696_v54 = vld [vmem:[#allocation4 + $0x350] sm:$0xff]  ;;  %v1102_v55 = vld [vmem:[#allocation9 + $0x140] sm:$0xff] }
  0xcb   : > { %967 = vmatprep.subr.mxu0 %v661_v56  ;;  %1932 = vmatprep.subr.mxu1 %v1083_v57  ;;  %v695_v56 = vld [vmem:[#allocation4 + $0x348] sm:$0xff]  ;;  %v1117_v57 = vld [vmem:[#allocation9 + $0x1b8] sm:$0xff] }
  0xcc   : > { %968 = vmatpush1.msra.mxu0 %v660_v58  ;;  %1933 = vmatpush3.msra.mxu1 %v1067_v60  ;;  %v694_v58 = vld [vmem:[#allocation4 + $0x340] sm:$0xff]  ;;  %v1101_v60 = vld [vmem:[#allocation9 + $0x138] sm:$0xff] }
  0xcd   : > { %969 = vmatprep.subr.mxu0 %v659_v61  ;;  %1934 = vmatprep.subr.mxu1 %v1082_v62  ;;  %v693_v61 = vld [vmem:[#allocation4 + $0x338] sm:$0xff]  ;;  %v1116_v62 = vld [vmem:[#allocation9 + $0x1b0] sm:$0xff] }
  0xce   : > { %970 = vmatpush1.msra.mxu0 %v658_v63  ;;  %1935 = vmatpush3.msra.mxu1 %v1066_v1  ;;  %v692_v63 = vld [vmem:[#allocation4 + $0x330] sm:$0xff] }
  0xcf   : > { %971 = vmatprep.subr.mxu0 %v657_v2  ;;  %1936 = vmatprep.subr.mxu1 %v1081_v4  ;;  %v1100_v1 = vld [vmem:[#allocation9 + $0x130] sm:$0xff]  ;;  %v691_v2 = vld [vmem:[#allocation4 + $0x328] sm:$0xff] }
  0xd0   : > { %972 = vmatpush1.msra.mxu0 %v656_v5  ;;  %1937 = vmatpush3.msra.mxu1 %v1065_v6  ;;  %v1115_v4 = vld [vmem:[#allocation9 + $0x1a8] sm:$0xff]  ;;  %v690_v5 = vld [vmem:[#allocation4 + $0x320] sm:$0xff] }
  0xd1   : > { %973 = vmatprep.subr.mxu0 %v655_v7  ;;  %1938 = vmatprep.subr.mxu1 %v1080_v9  ;;  %v1099_v6 = vld [vmem:[#allocation9 + $0x128] sm:$0xff]  ;;  %v689_v7 = vld [vmem:[#allocation4 + $0x318] sm:$0xff]  ;;  %v1114_v9 = vld [vmem:[#allocation9 + $0x1a0] sm:$0xff] }
  0xd2   : > { %974 = vmatpush1.msra.mxu0 %v654_v11  ;;  %1939 = vmatpush3.msra.mxu1 %v1064_v12  ;;  %v688_v11 = vld [vmem:[#allocation4 + $0x310] sm:$0xff]  ;;  %v687_v12 = vld [vmem:[#allocation4 + $0x308] sm:$0xff] }
  0xd3   : > { %975 = vmatprep.subr.mxu0 %v717_v14  ;;  %1940 = vmatprep.subr.mxu1 %v1079_v15  ;;  %v686_v14 = vld [vmem:[#allocation4 + $0x300] sm:$0xff]  ;;  %v587_v15 = vld [vmem:[%s2724_s12 + $0x10] sm:$0xff] }
  0xd4   : > { %976 = vmatpush2.msra.mxu0 %v716_v16  ;;  %1941 = vmatpush3.msra.mxu1 %v1063_v17  ;;  %v1098_v16 = vld [vmem:[#allocation9 + $0x120] sm:$0xff]  ;;  %v1113_v17 = vld [vmem:[#allocation9 + $0x198] sm:$0xff] }
  0xd5   : > { %977 = vmatprep.subr.mxu0 %v715_v18  ;;  %1942 = vmatprep.subr.mxu1 %v1078_v19  ;;  %v1097_v18 = vld [vmem:[#allocation9 + $0x118] sm:$0xff]  ;;  %v1112_v19 = vld [vmem:[#allocation9 + $0x190] sm:$0xff] }
  0xd6   : > { %978 = vmatpush2.msra.mxu0 %v714_v20  ;;  %1943 = vmatpush3.msra.mxu1 %v1062_v21  ;;  %v1096_v20 = vld [vmem:[#allocation9 + $0x110] sm:$0xff]  ;;  %v1111_v21 = vld [vmem:[#allocation9 + $0x188] sm:$0xff] }
  0xd7   : > { %979 = vmatprep.subr.mxu0 %v713_v22  ;;  %1190 = vmatprep.mubr.f32.mxu1 %v2957_v8  ;;  %v705_v8 = vld [vmem:[#allocation4 + $0x398] sm:$0xff]  ;;  %v1095_v22 = vld [vmem:[#allocation9 + $0x108] sm:$0xff] }
  0xd8   : > { %980 = vmatpush2.msra.mxu0 %v712_v23  ;;  %1947 = vmatprep.subr.mxu1 %v1125_v24  ;;  %v1110_v23 = vld [vmem:[#allocation9 + $0x180] sm:$0xff] }
  0xd9   : > { %981 = vmatprep.subr.mxu0 %v711_v25  ;;  %1191 = vmatmul.mubr.f32.vlgmr.msra.gmra.mxu1 %v2961_v10  ;;  %v1121_v10 = vld [vmem:[#allocation9 + $0x1d8] sm:$0xff]  ;;  %v1094_v24 = vld [vmem:[#allocation9 + $0x100] sm:$0xff] }
  0xda   : > { %982 = vmatpush2.msra.mxu0 %v710_v26  ;;  %1948 = vmatpush3.msra.mxu1 %v1109_v27  ;;  %v1061_v25 = vld [vmem:[#allocation6 + $0xf8] sm:$0xff] }
  0xdb   : > { %983 = vmatprep.subr.mxu0 %v709_v28  ;;  %1949 = vmatprep.subr.mxu1 %v1124_v29  ;;  %v1351_v26 = vld [vmem:[#allocation7 + $0x78] sm:$0xff]  ;;  %v1060_v28 = vld [vmem:[#allocation6 + $0xf0] sm:$0xff] }
  0xdc   : > { %984 = vmatpush2.msra.mxu0 %v708_v30  ;;  %1950 = vmatpush3.msra.mxu1 %v1108_v31  ;;  %v1045_v27 = vld [vmem:[#allocation6 + $0x78] sm:$0xff]  ;;  %v1366_v29 = vld [vmem:[#allocation7 + $0xf0] sm:$0xff] }
  0xdd   : > { %985 = vmatprep.subr.mxu0 %v707_v32  ;;  %1951 = vmatprep.subr.mxu1 %v1123_v33  ;;  %v1044_v30 = vld [vmem:[#allocation6 + $0x70] sm:$0xff]  ;;  %v1059_v32 = vld [vmem:[#allocation6 + $0xe8] sm:$0xff] }
  0xde   : > { %986 = vmatpush2.msra.mxu0 %v706_v34  ;;  %1952 = vmatpush3.msra.mxu1 %v1107_v35  ;;  %v1350_v31 = vld [vmem:[#allocation7 + $0x70] sm:$0xff]  ;;  %v1365_v33 = vld [vmem:[#allocation7 + $0xe8] sm:$0xff] }
  0xdf   : > { %987 = vmatprep.subr.mxu0 %v705_v8  ;;  %1953 = vmatprep.subr.mxu1 %v1122_v36  ;;  %v1043_v34 = vld [vmem:[#allocation6 + $0x68] sm:$0xff]  ;;  %v1058_v8 = vld [vmem:[#allocation6 + $0xe0] sm:$0xff] }
  0xe0   : > { %988 = vmatpush2.msra.mxu0 %v704_v37  ;;  %1954 = vmatpush3.msra.mxu1 %v1106_v38  ;;  %v1349_v35 = vld [vmem:[#allocation7 + $0x68] sm:$0xff]  ;;  %v1364_v36 = vld [vmem:[#allocation7 + $0xe0] sm:$0xff] }
  0xe1   : > { %989 = vmatprep.subr.mxu0 %v703_v39  ;;  %1955 = vmatprep.subr.mxu1 %v1121_v10  ;;  %v1042_v37 = vld [vmem:[#allocation6 + $0x60] sm:$0xff]  ;;  %v1057_v39 = vld [vmem:[#allocation6 + $0xd8] sm:$0xff] }
  0xe2   : > { %990 = vmatpush2.msra.mxu0 %v702_v40  ;;  %1956 = vmatpush3.msra.mxu1 %v1105_v41  ;;  %v1348_v38 = vld [vmem:[#allocation7 + $0x60] sm:$0xff]  ;;  %v1363_v10 = vld [vmem:[#allocation7 + $0xd8] sm:$0xff] }
  0xe3   : > { %991 = vmatprep.subr.mxu0 %v701_v42  ;;  %1957 = vmatprep.subr.mxu1 %v1120_v43  ;;  %v1041_v40 = vld [vmem:[#allocation6 + $0x58] sm:$0xff]  ;;  %v1056_v42 = vld [vmem:[#allocation6 + $0xd0] sm:$0xff] }
  0xe4   : > { %992 = vmatpush2.msra.mxu0 %v700_v45  ;;  %1958 = vmatpush3.msra.mxu1 %v1104_v46  ;;  %v1347_v41 = vld [vmem:[#allocation7 + $0x58] sm:$0xff]  ;;  %v1362_v43 = vld [vmem:[#allocation7 + $0xd0] sm:$0xff] }
  0xe5   : > { %993 = vmatprep.subr.mxu0 %v699_v47  ;;  %1959 = vmatprep.subr.mxu1 %v1119_v48  ;;  %v1040_v45 = vld [vmem:[#allocation6 + $0x50] sm:$0xff]  ;;  %v1055_v47 = vld [vmem:[#allocation6 + $0xc8] sm:$0xff] }
  0xe6   : > { %994 = vmatpush2.msra.mxu0 %v698_v49  ;;  %1960 = vmatpush3.msra.mxu1 %v1103_v50  ;;  %v1346_v46 = vld [vmem:[#allocation7 + $0x50] sm:$0xff]  ;;  %v1361_v48 = vld [vmem:[#allocation7 + $0xc8] sm:$0xff] }
  0xe7   : > { %995 = vmatprep.subr.mxu0 %v697_v51  ;;  %1961 = vmatprep.subr.mxu1 %v1118_v52  ;;  %v1039_v49 = vld [vmem:[#allocation6 + $0x48] sm:$0xff]  ;;  %v1054_v51 = vld [vmem:[#allocation6 + $0xc0] sm:$0xff] }
  0xe8   : > { %996 = vmatpush2.msra.mxu0 %v696_v54  ;;  %1962 = vmatpush3.msra.mxu1 %v1102_v55  ;;  %v1345_v50 = vld [vmem:[#allocation7 + $0x48] sm:$0xff]  ;;  %v1360_v52 = vld [vmem:[#allocation7 + $0xc0] sm:$0xff] }
  0xe9   : > { %997 = vmatprep.subr.mxu0 %v695_v56  ;;  %1963 = vmatprep.subr.mxu1 %v1117_v57  ;;  %v1038_v54 = vld [vmem:[#allocation6 + $0x40] sm:$0xff]  ;;  %v1053_v56 = vld [vmem:[#allocation6 + $0xb8] sm:$0xff] }
  0xea   : > { %998 = vmatpush2.msra.mxu0 %v694_v58  ;;  %1964 = vmatpush3.msra.mxu1 %v1101_v60  ;;  %v1344_v55 = vld [vmem:[#allocation7 + $0x40] sm:$0xff]  ;;  %v1359_v57 = vld [vmem:[#allocation7 + $0xb8] sm:$0xff] }
  0xeb   : > { %999 = vmatprep.subr.mxu0 %v693_v61  ;;  %1965 = vmatprep.subr.mxu1 %v1116_v62  ;;  %v1037_v58 = vld [vmem:[#allocation6 + $0x38] sm:$0xff]  ;;  %v1052_v61 = vld [vmem:[#allocation6 + $0xb0] sm:$0xff] }
  0xec   : > { %1000 = vmatpush2.msra.mxu0 %v692_v63  ;;  %1966 = vmatpush3.msra.mxu1 %v1100_v1  ;;  %v1343_v60 = vld [vmem:[#allocation7 + $0x38] sm:$0xff]  ;;  %v1358_v62 = vld [vmem:[#allocation7 + $0xb0] sm:$0xff] }
  0xed   : > { %1001 = vmatprep.subr.mxu0 %v691_v2  ;;  %1967 = vmatprep.subr.mxu1 %v1115_v4  ;;  %v1036_v63 = vld [vmem:[#allocation6 + $0x30] sm:$0xff]  ;;  %v1051_v2 = vld [vmem:[#allocation6 + $0xa8] sm:$0xff] }
  0xee   : > { %1002 = vmatpush2.msra.mxu0 %v690_v5  ;;  %1968 = vmatpush3.msra.mxu1 %v1099_v6  ;;  %v1342_v1 = vld [vmem:[#allocation7 + $0x30] sm:$0xff]  ;;  %v1357_v4 = vld [vmem:[#allocation7 + $0xa8] sm:$0xff] }
  0xef   : > { %1003 = vmatprep.subr.mxu0 %v689_v7  ;;  %1969 = vmatprep.subr.mxu1 %v1114_v9  ;;  %v1035_v5 = vld [vmem:[#allocation6 + $0x28] sm:$0xff]  ;;  %v1050_v7 = vld [vmem:[#allocation6 + $0xa0] sm:$0xff] }
  0xf0   : > { %1004 = vmatpush2.msra.mxu0 %v688_v11  ;;  %1260 = vmatprep.mubr.f32.mxu1 %v2964_v13  ;;  %v1367_v13 = vld [vmem:[#allocation7 + $0xf8] sm:$0xff]  ;;  %v1341_v6 = vld [vmem:[#allocation7 + $0x28] sm:$0xff]  ;;  %v1356_v9 = vld [vmem:[#allocation7 + $0xa0] sm:$0xff] }
  0xf1   : > { %1005 = vmatprep.subr.mxu0 %v687_v12  ;;  %1970 = vmatpush3.msra.mxu1 %v1098_v16  ;;  %v1340_v11 = vld [vmem:[#allocation7 + $0x20] sm:$0xff]  ;;  %v1339_v16 = vld [vmem:[#allocation7 + $0x18] sm:$0xff] }
  0xf2   : > { %1006 = vmatpush2.msra.mxu0 %v686_v14  ;;  %1971 = vmatprep.subr.mxu1 %v1113_v17  ;;  %v1034_v12 = vld [vmem:[#allocation6 + $0x20] sm:$0xff]  ;;  %v1355_v14 = vld [vmem:[#allocation7 + $0x98] sm:$0xff] }
  0xf3   : > { %1008 = vmatmul.mubr.f32.vlgmr.msra.gmra.mxu0 %v587_v15  ;;  %1972 = vmatpush3.msra.mxu1 %v1097_v18  ;;  %v1033_v17 = vld [vmem:[#allocation6 + $0x18] sm:$0xff]  ;;  %v1354_v18 = vld [vmem:[#allocation7 + $0x90] sm:$0xff] }
  0xf4   : > { %1973 = vmatprep.subr.mxu1 %v1112_v19  ;;  %1982 = vmatprep.subr.mxu0 %v1061_v25  ;;  %v1048_v19 = vld [vmem:[#allocation6 + $0x90] sm:$0xff]  ;;  %v1046_v25 = vld [vmem:[#allocation6 + $0x80] sm:$0xff] }
  0xf5   : > { %1974 = vmatpush3.msra.mxu1 %v1096_v20  ;;  %1983 = vmatpush3.msra.mxu0 %v1045_v27  ;;  %v1338_v20 = vld [vmem:[#allocation7 + $0x10] sm:$0xff]  ;;  %v1030_v27 = vld [vmem:[#allocation6] sm:$0xff] }
  0xf6   : > { %1975 = vmatprep.subr.mxu1 %v1111_v21  ;;  %1984 = vmatprep.subr.mxu0 %v1060_v28  ;;  %v1032_v21 = vld [vmem:[#allocation6 + $0x10] sm:$0xff]  ;;  %v1499_v28 = vld [vmem:[%s3235_s10 + $0xf8] sm:$0xff] }
  0xf7   : > { %1976 = vmatpush3.msra.mxu1 %v1095_v22  ;;  %1985 = vmatpush3.msra.mxu0 %v1044_v30  ;;  %v1353_v22 = vld [vmem:[#allocation7 + $0x88] sm:$0xff]  ;;  %v2502_v30 = vmov 0.0  }
  0xf8   : > { %1977 = vmatprep.subr.mxu1 %v1110_v23  ;;  %1986 = vmatprep.subr.mxu0 %v1059_v32  ;;  %v1337_v23 = vld [vmem:[#allocation7 + $0x8] sm:$0xff]  ;;  %v1464_v32 = vld [vmem:[%s3234_s9 + $0x60] sm:$0xff] }
  0xf9   : > { %1978 = vmatpush3.msra.mxu1 %v1094_v24  ;;  %1987 = vmatpush3.msra.mxu0 %v1043_v34  ;;  %v1031_v24 = vld [vmem:[#allocation6 + $0x8] sm:$0xff]  ;;  %v1462_v34 = vld [vmem:[%s3234_s9 + $0x50] sm:$0xff] }
  0xfa   : > { %1261 = vmatmul.mubr.f32.vlgmr.msra.gmra.mxu1 %v587_v15  ;;  %2017 = vmatprep.subr.mxu1 %v1367_v13  ;;  %v1049_v15 = vld [vmem:[#allocation6 + $0x98] sm:$0xff]  ;;  %v1352_v13 = vld [vmem:[#allocation7 + $0x80] sm:$0xff] }
  0xfb   : > { %2018 = vmatpush3.msra.mxu1 %v1351_v26  ;;  %1988 = vmatprep.subr.mxu0 %v1058_v8  ;;  %v1336_v26 = vld [vmem:[#allocation7] sm:$0xff] }
  0xfc   : > { %2019 = vmatprep.subr.mxu1 %v1366_v29  ;;  %1989 = vmatpush3.msra.mxu0 %v1042_v37  ;;  %v1467_v29 = vld [vmem:[%s3234_s9 + $0x78] sm:$0xff]  ;;  %v1460_v8 = vld [vmem:[%s3234_s9 + $0x40] sm:$0xff] }
  0xfd   : > { %2020 = vmatpush3.msra.mxu1 %v1350_v31  ;;  %1990 = vmatprep.subr.mxu0 %v1057_v39  ;;  %v1466_v31 = vld [vmem:[%s3234_s9 + $0x70] sm:$0xff] }
  0xfe   : > { %2021 = vmatprep.subr.mxu1 %v1365_v33  ;;  %1991 = vmatpush3.msra.mxu0 %v1041_v40  ;;  %v1463_v33 = vld [vmem:[%s3234_s9 + $0x58] sm:$0xff] }
  0xff   : > { %2022 = vmatpush3.msra.mxu1 %v1349_v35  ;;  %1992 = vmatprep.subr.mxu0 %v1056_v42  ;;  %v1461_v35 = vld [vmem:[%s3234_s9 + $0x48] sm:$0xff] }
 0x100   : > { %2023 = vmatprep.subr.mxu1 %v1364_v36  ;;  %1993 = vmatpush3.msra.mxu0 %v1040_v45  ;;  %v1459_v36 = vld [vmem:[%s3234_s9 + $0x38] sm:$0xff] }
 0x101   : > { %2024 = vmatpush3.msra.mxu1 %v1348_v38  ;;  %1994 = vmatprep.subr.mxu0 %v1055_v47 }
 0x102   : > { %2025 = vmatprep.subr.mxu1 %v1363_v10  ;;  %1995 = vmatpush3.msra.mxu0 %v1039_v49 }
 0x103   : > { %2026 = vmatpush3.msra.mxu1 %v1347_v41  ;;  %1996 = vmatprep.subr.mxu0 %v1054_v51  ;;  %v1014_v41 = vld [vmem:[%s3267_s28] sm:$0x3] }
 0x104   : > { %2027 = vmatprep.subr.mxu1 %v1362_v43  ;;  %1997 = vmatpush3.msra.mxu0 %v1038_v54  ;;  %v1023_v49 = vrot.slane %v1014_v41, %v789_v53  ;;  %v1497_v53 = vld [vmem:[%s3235_s10 + $0xe8] sm:$0xff] }
 0x105   : > { %2028 = vmatpush3.msra.mxu1 %v1346_v46  ;;  %1998 = vmatprep.subr.mxu0 %v1053_v56  ;;  %v1019_v46 = vrot.slane %v1014_v41, %v2934_v59 }
 0x106   : > { %2029 = vmatprep.subr.mxu1 %v1361_v48  ;;  %1999 = vmatpush3.msra.mxu0 %v1037_v58  ;;  %v1498_v58 = vld [vmem:[%s3235_s10 + $0xf0] sm:$0xff] }
 0x107   : > { %2030 = vmatpush3.msra.mxu1 %v1345_v50  ;;  %2000 = vmatprep.subr.mxu0 %v1052_v61  ;;  %v1496_v61 = vld [vmem:[%s3235_s10 + $0xe0] sm:$0xff] }
 0x108   : > { %2031 = vmatprep.subr.mxu1 %v1360_v52  ;;  %2001 = vmatpush3.msra.mxu0 %v1036_v63  ;;  %v1495_v63 = vld [vmem:[%s3235_s10 + $0xd8] sm:$0xff] }
 0x109   : > { %2032 = vmatpush3.msra.mxu1 %v1344_v55  ;;  %2002 = vmatprep.subr.mxu0 %v1051_v2  ;;  %v1494_v2 = vld [vmem:[%s3235_s10 + $0xd0] sm:$0xff] }
 0x10a   : > { %2033 = vmatprep.subr.mxu1 %v1359_v57  ;;  %2003 = vmatpush3.msra.mxu0 %v1035_v5  ;;  %v1483_v57 = vld [vmem:[%s3235_s10 + $0x78] sm:$0xff]  ;;  %v1493_v5 = vld [vmem:[%s3235_s10 + $0xc8] sm:$0xff] }
 0x10b   : > { %2034 = vmatpush3.msra.mxu1 %v1343_v60  ;;  %2004 = vmatprep.subr.mxu0 %v1050_v7  ;;  %v1481_v60 = vld [vmem:[%s3235_s10 + $0x68] sm:$0xff]  ;;  %v1492_v7 = vld [vmem:[%s3235_s10 + $0xc0] sm:$0xff] }
 0x10c   : > { %2035 = vmatprep.subr.mxu1 %v1358_v62  ;;  %1432 = vmatprep.mubr.f32.mxu1 %v2944_v0  ;;  %v1047_v0 = vld [vmem:[#allocation6 + $0x88] sm:$0xff]  ;;  %v1480_v62 = vld [vmem:[%s3235_s10 + $0x60] sm:$0xff] }
 0x10d   : > { %2036 = vmatpush3.msra.mxu1 %v1342_v1  ;;  %2005 = vmatpush3.msra.mxu0 %v1034_v12  ;;  %v1479_v1 = vld [vmem:[%s3235_s10 + $0x58] sm:$0xff] }
 0x10e   : > { %2037 = vmatprep.subr.mxu1 %v1357_v4  ;;  %2006 = vmatprep.subr.mxu0 %v1049_v15  ;;  %v1478_v4 = vld [vmem:[%s3235_s10 + $0x50] sm:$0xff]  ;;  %v1475_v12 = vld [vmem:[%s3235_s10 + $0x38] sm:$0xff] }
 0x10f   : > { %2038 = vmatpush3.msra.mxu1 %v1341_v6  ;;  %2007 = vmatpush3.msra.mxu0 %v1033_v17  ;;  %v1477_v6 = vld [vmem:[%s3235_s10 + $0x48] sm:$0xff]  ;;  %v1474_v15 = vld [vmem:[%s3235_s10 + $0x30] sm:$0xff] }
 0x110   : > { %2039 = vmatprep.subr.mxu1 %v1356_v9  ;;  %2008 = vmatprep.subr.mxu0 %v1048_v19  ;;  %v1476_v9 = vld [vmem:[%s3235_s10 + $0x40] sm:$0xff]  ;;  %v1473_v17 = vld [vmem:[%s3235_s10 + $0x28] sm:$0xff] }
 0x111   : > { %2040 = vmatpush3.msra.mxu1 %v1340_v11  ;;  %2009 = vmatpush3.msra.mxu0 %v1032_v21  ;;  %v1491_v11 = vld [vmem:[%s3235_s10 + $0xb8] sm:$0xff]  ;;  %v1472_v19 = vld [vmem:[%s3235_s10 + $0x20] sm:$0xff] }
 0x112   : > { %2041 = vmatprep.subr.mxu1 %v1355_v14  ;;  %2010 = vmatprep.subr.mxu0 %v1047_v0  ;;  %v1490_v14 = vld [vmem:[%s3235_s10 + $0xb0] sm:$0xff]  ;;  %v1471_v21 = vld [vmem:[%s3235_s10 + $0x18] sm:$0xff] }
 0x113   : > { %2042 = vmatpush3.msra.mxu1 %v1339_v16  ;;  %2011 = vmatpush3.msra.mxu0 %v1031_v24  ;;  %v1489_v16 = vld [vmem:[%s3235_s10 + $0xa8] sm:$0xff]  ;;  %v1470_v0 = vld [vmem:[%s3235_s10 + $0x10] sm:$0xff] }
 0x114   : > { %2043 = vmatprep.subr.mxu1 %v1354_v18  ;;  %2012 = vmatprep.subr.mxu0 %v1046_v25  ;;  %v1488_v18 = vld [vmem:[%s3235_s10 + $0xa0] sm:$0xff]  ;;  %v1469_v24 = vld [vmem:[%s3235_s10 + $0x8] sm:$0xff] }
 0x115   : > { %2044 = vmatpush3.msra.mxu1 %v1338_v20  ;;  %2013 = vmatpush3.msra.mxu0 %v1030_v27  ;;  %v1487_v20 = vld [vmem:[%s3235_s10 + $0x98] sm:$0xff]  ;;  %v1468_v25 = vld [vmem:[%s3235_s10] sm:$0xff]  ;;  %v1457_v27 = vld [vmem:[%s3234_s9 + $0x28] sm:$0xff] }
 0x116   : > { %2045 = vmatprep.subr.mxu1 %v1353_v22  ;;  %2052 = vmatprep.subr.mxu0 %v1499_v28  ;;  %v1486_v22 = vld [vmem:[%s3235_s10 + $0x90] sm:$0xff]  ;;  %v1456_v28 = vld [vmem:[%s3234_s9 + $0x20] sm:$0xff] }
 0x117   : > { %2046 = vmatpush3.msra.mxu1 %v1337_v23  ;;  %v1485_v23 = vld [vmem:[%s3235_s10 + $0x88] sm:$0xff] }
 0x118   : > { %2047 = vmatprep.subr.mxu1 %v1352_v13  ;;  %v1484_v13 = vld [vmem:[%s3235_s10 + $0x80] sm:$0xff] }
 0x119   : > { %2048 = vmatpush3.msra.mxu1 %v1336_v26  ;;  %v1458_v26 = vld [vmem:[%s3234_s9 + $0x30] sm:$0xff] }
 0x11a   : > { %1433 = vmatmul.mubr.f32.vlgmr.msra.gmra.mxu1 %v2953_v3  ;;  %2113 = vmatprep.subr.mxu1 %v2502_v30  ;;  %v1465_v3 = vld [vmem:[%s3234_s9 + $0x68] sm:$0xff] }
 0x11b   : > { %2114 = vmatpush3.msra.mxu1 %v1467_v29  ;;  %v1455_v29 = vld [vmem:[%s3234_s9 + $0x18] sm:$0xff]  ;;  %2145 = vmatprep.mubr.msk.f32.mxu1 %vm2503_vm0, %v2502_v30 }
 0x11c   : > { %2115 = vmatprep.subr.mxu1 %v2502_v30 }
 0x11d   : > { %2116 = vmatpush3.msra.mxu1 %v1466_v31  ;;  %v1454_v31 = vld [vmem:[%s3234_s9 + $0x10] sm:$0xff] }
 0x11e   : > { %2117 = vmatprep.subr.mxu1 %v2502_v30 }
 0x11f   : > { %2118 = vmatpush3.msra.mxu1 %v1465_v3  ;;  %v1453_v3 = vld [vmem:[%s3234_s9 + $0x8] sm:$0xff] }
 0x120   : > { %2119 = vmatprep.subr.mxu1 %v2502_v30 }
 0x121   : > { %2120 = vmatpush3.msra.mxu1 %v1464_v32  ;;  %v1452_v32 = vld [vmem:[%s3234_s9] sm:$0xff] }
 0x122   : > { %2121 = vmatprep.subr.mxu1 %v2502_v30 }
 0x123   : > { %2122 = vmatpush3.msra.mxu1 %v1463_v33  ;;  %v1656_v33 = vld [vmem:[%s3268_s23 + $0x38] sm:$0xff] }
 0x124   : > { %2123 = vmatprep.subr.mxu1 %v2502_v30 }
 0x125   : > { %2124 = vmatpush3.msra.mxu1 %v1462_v34  ;;  %v1655_v34 = vld [vmem:[%s3268_s23 + $0x30] sm:$0xff] }
 0x126   : > { %2125 = vmatprep.subr.mxu1 %v2502_v30 }
 0x127   : > { %2126 = vmatpush3.msra.mxu1 %v1461_v35  ;;  %v1654_v35 = vld [vmem:[%s3268_s23 + $0x28] sm:$0xff] }
 0x128   : > { %2127 = vmatprep.subr.mxu1 %v2502_v30 }
 0x129   : > { %2128 = vmatpush3.msra.mxu1 %v1460_v8  ;;  %v1653_v8 = vld [vmem:[%s3268_s23 + $0x20] sm:$0xff] }
 0x12a   : > { %2129 = vmatprep.subr.mxu1 %v2502_v30 }
 0x12b   : > { %2130 = vmatpush3.msra.mxu1 %v1459_v36 }
 0x12c   : > { %2131 = vmatprep.subr.mxu1 %v2502_v30 }
 0x12d   : > { %2132 = vmatpush3.msra.mxu1 %v1458_v26 }
 0x12e   : > { %2133 = vmatprep.subr.mxu1 %v2502_v30 }
 0x12f   : > { %2134 = vmatpush3.msra.mxu1 %v1457_v27 }
 0x130   : > { %2135 = vmatprep.subr.mxu1 %v2502_v30 }
 0x131   : > { %2136 = vmatpush3.msra.mxu1 %v1456_v28 }
 0x132   : > { %2137 = vmatprep.subr.mxu1 %v2502_v30 }
 0x133   : > { %2138 = vmatpush3.msra.mxu1 %v1455_v29 }
 0x134   : > { %2139 = vmatprep.subr.mxu1 %v2502_v30 }
 0x135   : > { %2140 = vmatpush3.msra.mxu1 %v1454_v31 }
 0x136   : > { %2141 = vmatprep.subr.mxu1 %v2502_v30 }
 0x137   : > { %2142 = vmatpush3.msra.mxu1 %v1453_v3 }
 0x138   : > { %2143 = vmatprep.subr.mxu1 %v2502_v30 }
 0x139   : > { %2144 = vmatpush3.msra.mxu1 %v1452_v32 }
 0x172   : > { %v859_v37 = vpop.f32.mrf.mxu0 }
 0x173   : > { %v867_v10 = vrot.slane %v859_v37, %v2934_v59 }
 0x174   : > { %v861_v38 = vpop.f32.mrf.mxu0 }
 0x175   : > { %v938_v39 = vpop.f32.mrf.mxu1  ;;  %v871_v40 = vrot.slane %v861_v38, %v2934_v59 }
 0x176   : > { %v939_v43 = vadd.f32 %v938_v39, %v867_v10 }
 0x177   : > { %v940_v42 = vpop.f32.mrf.mxu1 }
 0x178   : > { %v941_v47 = vadd.f32 %v940_v42, %v871_v40 }
 0x199   : > { %v1944_v36 = vpop.f32.mrf.mxu1 }
 0x19b   : > { %v1945_v37 = vpop.f32.mrf.mxu1 }
 0x19c   : > { %v1946_v41 = vadd.f32 %v1945_v37, %v1944_v36 }
 0x1b3   : > { %v1009_v45 = vpop.f32.mrf.mxu0 }
 0x1b4   : > { %v1010_v48 = vadd.f32 %v1009_v45, %v939_v43 }
 0x1b5   : > { %v1011_v50 = vpop.f32.mrf.mxu0 }
 0x1b6   : > { %v1012_v51 = vadd.f32 %v1011_v50, %v941_v47  ;;  %v3023_v52 = vadd.f32 %v1019_v46, %v1010_v48 }
 0x1b8   : > { %v1027_v54 = vadd.f32 %v1023_v49, %v1012_v51  ;;  %v1028_v56 = vmax.f32 %v3023_v52, 0.0  ;;  %v1906_v51 = vld [vmem:[%s3269_s22] ss:$0 sm:$0xff]  ;;  %s3272_s22 = sld [smem:[#allocation24_spill]] }
 0x1ba   : > { %v1029_v55 = vmax.f32 %v1027_v54, 0.0  ;;  %v1979_v38 = vpop.f32.mrf.mxu1 }
 0x1bc   : > { %1330 = vmatprep.mubr.f32.mxu0 %v1029_v55  ;;  %v1980_v39 = vpop.f32.mrf.mxu1 }
 0x1bd   : > { %1331 = vmatmul.mubr.f32.vlgmr.msra.gmra.mxu0 %v1028_v56  ;;  %v1981_v42 = vadd.f32 %v1980_v39, %v1979_v38 }
 0x1be   : > { %2053 = vmatpush3.msra.mxu0 %v1483_v57  ;;  %1564 = vmatprep.mubr.f32.mxu0 %v1029_v55  ;;  %v1650_v57 = vld [vmem:[%s3268_s23 + $0x8] sm:$0xff] }
 0x1bf   : > { %2054 = vmatprep.subr.mxu0 %v1498_v58  ;;  %v1263_v47 = vadd.f32 %v1981_v42, %v1946_v41  ;;  %v1649_v58 = vld [vmem:[%s3268_s23] sm:$0xff] }
 0x1c0   : > { %2055 = vmatpush3.msra.mxu0 %v1482_v44 }
 0x1c1   : > { %2056 = vmatprep.subr.mxu0 %v1497_v53 }
 0x1c2   : > { %2057 = vmatpush3.msra.mxu0 %v1481_v60 }
 0x1c3   : > { %2058 = vmatprep.subr.mxu0 %v1496_v61 }
 0x1c4   : > { %2059 = vmatpush3.msra.mxu0 %v1480_v62  ;;  %v1907_v62 = vld [vmem:[%s3271_s21] ss:$0 sm:$0xff] }
 0x1c5   : > { %2060 = vmatprep.subr.mxu0 %v1495_v63 }
 0x1c6   : > { %2061 = vmatpush3.msra.mxu0 %v1479_v1 }
 0x1c7   : > { %2062 = vmatprep.subr.mxu0 %v1494_v2 }
 0x1c8   : > { %2063 = vmatpush3.msra.mxu0 %v1478_v4 }
 0x1c9   : > { %2064 = vmatprep.subr.mxu0 %v1493_v5 }
 0x1ca   : > { %2065 = vmatpush3.msra.mxu0 %v1477_v6 }
 0x1cb   : > { %2066 = vmatprep.subr.mxu0 %v1492_v7 }
 0x1cc   : > { %2067 = vmatpush3.msra.mxu0 %v1476_v9 }
 0x1cd   : > { %2068 = vmatprep.subr.mxu0 %v1491_v11 }
 0x1ce   : > { %2069 = vmatpush3.msra.mxu0 %v1475_v12 }
 0x1cf   : > { %2070 = vmatprep.subr.mxu0 %v1490_v14 }
 0x1d0   : > { %2071 = vmatpush3.msra.mxu0 %v1474_v15 }
 0x1d1   : > { %2072 = vmatprep.subr.mxu0 %v1489_v16 }
 0x1d2   : > { %2073 = vmatpush3.msra.mxu0 %v1473_v17 }
 0x1d3   : > { %2074 = vmatprep.subr.mxu0 %v1488_v18 }
 0x1d4   : > { %2075 = vmatpush3.msra.mxu0 %v1472_v19 }
 0x1d5   : > { %2076 = vmatprep.subr.mxu0 %v1487_v20 }
 0x1d6   : > { %2077 = vmatpush3.msra.mxu0 %v1471_v21 }
 0x1d7   : > { %2078 = vmatprep.subr.mxu0 %v1486_v22 }
 0x1d8   : > { %2079 = vmatpush3.msra.mxu0 %v1470_v0 }
 0x1d9   : > { %2080 = vmatprep.subr.mxu0 %v1485_v23 }
 0x1da   : > { %2081 = vmatpush3.msra.mxu0 %v1469_v24  ;;  %v2049_v10 = vpop.f32.mrf.mxu1 }
 0x1db   : > { %2082 = vmatprep.subr.mxu0 %v1484_v13 }
 0x1dc   : > { %2083 = vmatpush3.msra.mxu0 %v1468_v25  ;;  %v2050_v40 = vpop.f32.mrf.mxu1 }
 0x1dd   : > { %1565 = vmatmul.mubr.f32.vlgmr.msra.gmra.mxu0 %v1028_v56  ;;  %2148 = vmatprep.subr.mxu0 %v2502_v30  ;;  %v2051_v45 = vadd.f32 %v2050_v40, %v2049_v10  ;;  %v1652_v56 = vld [vmem:[%s3268_s23 + $0x18] sm:$0xff] }
 0x1de   : > { %2164 = vmatprep.mubr.msk.f32.mxu0 %vm2503_vm0, %v2502_v30  ;;  %2149 = vmatpush3.msra.mxu0 %v1656_v33 }
 0x1df   : > { %2150 = vmatprep.subr.mxu0 %v2502_v30  ;;  %v1441_v49 = vrot.slane %v2051_v45, %v2934_v59  ;;  %v1651_v59 = vld [vmem:[%s3268_s23 + $0x10] sm:$0xff] }
 0x1e0   : > { %2151 = vmatpush3.msra.mxu0 %v1655_v34 }
 0x1e1   : > { %2152 = vmatprep.subr.mxu0 %v2502_v30 }
 0x1e2   : > { %2153 = vmatpush3.msra.mxu0 %v1654_v35 }
 0x1e3   : > { %2154 = vmatprep.subr.mxu0 %v2502_v30 }
 0x1e4   : > { %2155 = vmatpush3.msra.mxu0 %v1653_v8 }
 0x1e5   : > { %2156 = vmatprep.subr.mxu0 %v2502_v30 }
 0x1e6   : > { %2157 = vmatpush3.msra.mxu0 %v1652_v56 }
 0x1e7   : > { %2158 = vmatprep.subr.mxu0 %v2502_v30 }
 0x1e8   : > { %2159 = vmatpush3.msra.mxu0 %v1651_v59 }
 0x1e9   : > { %2160 = vmatprep.subr.mxu0 %v2502_v30 }
 0x1ea   : > { %2161 = vmatpush3.msra.mxu0 %v1650_v57 }
 0x1eb   : > { %2162 = vmatprep.subr.mxu0 %v2502_v30  ;;  %v1908_v30 = vld [vmem:[%s3272_s22] ss:$0 sm:$0xff] }
 0x1ec   : > { %2163 = vmatpush3.msra.mxu0 %v1649_v58 }
 0x27d   : > { %v2014_v43 = vpop.f32.mrf.mxu0 }
 0x27f   : > { %v2015_v46 = vpop.f32.mrf.mxu0 }
 0x280   : > { %v2016_v48 = vadd.f32 %v2015_v46, %v2014_v43 }
 0x282   : > { %v1333_v50 = vadd.f32 %v2016_v48, %v1263_v47 }
 0x284   : > { %v1442_v52 = vadd.f32 %v1441_v49, %v1333_v50 }
 0x286   : > { %v1450_v54 = vadd.f32 %v1906_v51, %v1442_v52 }
 0x288   : > { %v1451_v55 = vmax.f32 %v1450_v54, 0.0 }
 0x28a   : > { %2146 = vmatmul.mubr.f32.vlgmr.msra.gmra.mxu1 %v1451_v55 }
 0x29d   : > { %v2084_v44 = vpop.f32.mrf.mxu0 }
 0x29f   : > { %v2085_v53 = vpop.f32.mrf.mxu0 }
 0x2a0   : > { %v2086_v60 = vadd.f32 %v2085_v53, %v2084_v44 }
 0x34a   : > { %v1636_v61 = vpop.f32.mrf.mxu1 }
 0x34b   : > { %v1637_v63 = vadd.f32 %v2086_v60, %v1636_v61 }
 0x34c   : > { %v2147_v1 = vpop.f32.mrf.mxu1 }
 0x34d   : > { %v1647_v2 = vadd.f32 %v1907_v62, %v1637_v63 }
 0x34f   : > { %v1648_v4 = vmax.f32 %v1647_v2, 0.0 }
 0x351   : > { %2165 = vmatmul.mubr.msk.f32.vlgmr.msra.gmra.mxu0 %vm1664_vm1, %v1648_v4 }
 0x411   : > { %v1734_v5 = vpop.f32.mrf.mxu0 }
 0x412   : > { %v1735_v6 = vadd.f32 %v1908_v30, %v1734_v5 }
 0x413   : > { %v2166_v7 = vpop.f32.mrf.mxu0 }
 0x414   : > { %1739 = vst.msk [vmem:[%s584_s11] sm:$0xff] %vm1738_vm2, %v1735_v6 }
 0x415 PF: > { %s29_s20 = sadd.s32 1, %s2491_s20   ;;  %s3274_s7 = sld [smem:[#allocation14_spill]] }
 0x416   : > { %p26_p9 = scmp.ge.s32.totalorder %s29_s20, 6   ;;  %s3275_s6 = sld [smem:[#allocation15_spill]] }
 0x417   : > { %s3276_s29 = smov %s2467_s30  ;;  %s3277_s30 = smov %s2471_s15 }
 0x418   : > { %s3278_s15 = smov %s2704_s5  ;;  %s3279_s16 = smov %s2483_s18 }
 0x419   : > { %s3280_s17 = smov %s2487_s19  ;;  %28 = sbr.rel (!%p26_p9) target bundleno = 18 (0x12), region = 135 }
 0x41b   : > { %s3281_s18 = smov %s3274_s7 }
 0x41c   : > { %s3282_s19 = smov %s3275_s6 }
 0x41e   :  { %1767 = vsyncpa [#allocation3], 1 }
 0x41f   :  { %1769 = vsyncpa [#allocation3 + $0x1], 1 }
 0x420   :  { %1770 = vsyncpa [#allocation5], 1 }
 0x421   :  { %1771 = vsyncpa [#allocation8], 1 }

</bundles_post_ra>
